<compile_context>
chip_gen: v6e
topology: v6e:2x2x1
jax: 0.10.0
libtpu: 0.0.40
codegen_flags: <defaults>
</compile_context>

<pallas_src>
import functools
from math import ceil

import jax
import jax.numpy as jnp
from jax import lax
from jax.experimental import pallas as pl
from jax.experimental.pallas import tpu as pltpu

_LANES = 128
_PARAM_ORDER = ("wg1", "bg1", "wc1", "bc1",
                "wg2", "bg2", "wc2", "bc2",
                "wg3", "bg3", "wfc", "bfc")


# ----------------------------------------------------------------------------
# In-kernel building blocks (per graph, rank-2)
# ----------------------------------------------------------------------------
def _gcn_norm(xw, adj, b):
    """GCNLayer.forward given the precomputed feature transform xw = x @ W.

    relu(D^-1/2 (A+I) D^-1/2 @ xw + b), applied as d*(A@(d*xw) + d*xw) + b with
    deg = rowsum(A) + 1 (implicit self-loop; deg >= 1 so no inf guard needed).
    No identity matrix or normalized adjacency is ever materialized.
    """
    deg = jnp.sum(adj, axis=1, keepdims=True) + 1.0            # (n, 1)
    d = lax.rsqrt(deg)                                         # deg^-0.5
    dxw = d * xw
    out = d * (jnp.dot(adj, dxw, preferred_element_type=jnp.float32) + dxw) + b
    return jnp.maximum(out, 0.0)


def _softmax_rows(z):
    z = z - jnp.max(z, axis=-1, keepdims=True)
    e = jnp.exp(z)
    # approx reciprocal runs on the EUP slot; error is covered by the 1e-2 test
    # tolerance.  Use approx=False here if exact row-sums-to-1 are required.
    return e * pl.reciprocal(jnp.sum(e, axis=-1, keepdims=True), approx=True)


def _pool(x, adj, xw, b_g, w_c, b_c):
    """DiffPoolLayer.forward (only the outputs consumed by DiffPool.forward)."""
    x_gnn = _gcn_norm(xw, adj, b_g)        # already >= 0; module's 2nd ReLU is a no-op
    s = _softmax_rows(jnp.dot(x_gnn, w_c, preferred_element_type=jnp.float32) + b_c)
    # s^T @ x and s^T @ adj as dot_generals contracting the node axis: no
    # [x | adj] concat, no lane-misaligned slice, no explicit transpose value.
    dn = (((0,), (0,)), ((), ()))
    x_ass = lax.dot_general(s, x, dn, preferred_element_type=jnp.float32)    # (C, F)
    sa = lax.dot_general(s, adj, dn, preferred_element_type=jnp.float32)     # (C, N)
    adj_ass = jnp.dot(sa, s, preferred_element_type=jnp.float32)             # (C, C)
    # TODO(synk): entropy_mean and f_norm_adj are computed by DiffPoolLayer but
    # unused by DiffPool.forward's returned values, so they are omitted here.
    return x_gnn, x_ass, adj_ass


# ----------------------------------------------------------------------------
# Fused Pallas kernel: full DiffPool.forward for G graphs per grid step
# ----------------------------------------------------------------------------
def _diffpool_kernel(x_ref, adj_ref, slab_ref, out_ref, *,
                     layout, hidden, n_cls, out_pad):
    G, N, F = x_ref.shape

    # Hoist every parameter slice: exactly one (masked-lane) load per parameter
    # per grid step, regardless of compiler CSE.
    prm = {name: slab_ref[r0:r0 + r, 0:c] for name, (r0, r, c) in layout.items()}
    wg1, bg1, wc1, bc1 = prm["wg1"], prm["bg1"], prm["wc1"], prm["bc1"]
    wg2, bg2, wc2, bc2 = prm["wg2"], prm["bg2"], prm["wc2"], prm["bc2"]
    wg3, bg3, wfc, bfc = prm["wg3"], prm["bg3"], prm["wfc"], prm["bfc"]

    x_all = x_ref[...]                                           # (G, N, F)
    # Layer-1 feature transform batched over all G graphs: one MXU matmul.
    xw1_all = jnp.dot(x_all.reshape(G * N, F), wg1,
                      preferred_element_type=jnp.float32).reshape(G, N, hidden)

    pad_w = out_pad - hidden - n_cls
    pad = jnp.zeros((1, pad_w), jnp.float32) if pad_w > 0 else None

    rows = []
    for g in range(G):                   # static unroll; per-graph work is rank-2
        x = x_all[g]                                             # (N, F)
        adj = adj_ref[g]                                         # (N, N)

        x_gnn_1, x_ass_1, adj_ass_1 = _pool(x, adj, xw1_all[g], bg1, wc1, bc1)

        xw2 = jnp.dot(x_ass_1, wg2, preferred_element_type=jnp.float32)
        x_gnn_2, x_ass_2, adj_ass_2 = _pool(x_ass_1, adj_ass_1, xw2, bg2, wc2, bc2)

        xw3 = jnp.dot(x_ass_2, wg3, preferred_element_type=jnp.float32)
        x_gnn_3 = _gcn_norm(xw3, adj_ass_2, bg3)

        # GCN outputs are already ReLU'd -> the module's extra ReLUs are no-ops.
        emb = (jnp.mean(x_gnn_1, axis=0, keepdims=True)
               + jnp.mean(x_gnn_2, axis=0, keepdims=True)
               + jnp.mean(x_gnn_3, axis=0, keepdims=True)) * (1.0 / 3.0)  # (1, H)

        logits = jnp.dot(emb, wfc, preferred_element_type=jnp.float32) + bfc  # (1, C)

        parts = [emb, logits] if pad is None else [emb, logits, pad]
        rows.append(jnp.concatenate(parts, axis=-1))             # (1, out_pad)

    # Single lane-dense (G, 128) store per grid step: [emb | logits | zero pad].
    out_ref[...] = jnp.concatenate(rows, axis=0)


# ----------------------------------------------------------------------------
# Wrapper
# ----------------------------------------------------------------------------
def _pack_weight_slab(params):
    """Pack every weight/bias into one (rows, 128) f32 slab; rows padded to 8."""
    blocks, layout, row = [], {}, 0
    for name in _PARAM_ORDER:
        a = jnp.asarray(params[name], jnp.float32)
        r, c = a.shape
        rp = ((r + 7) // 8) * 8
        layout[name] = (row, r, c)
        blocks.append(jnp.pad(a, ((0, rp - r), (0, _LANES - c))))
        row += rp
    return jnp.concatenate(blocks, axis=0), layout


def _pick_graphs_per_step(B, max_graphs=8):
    """Largest divisor of B (<= max_graphs) that still leaves >= 2 grid steps,
    so both v7x TensorCores get work; harmless on v5e/v6e (1 TC)."""
    divisors = [g for g in range(1, min(B, max_graphs) + 1) if B % g == 0]
    two_step = [g for g in divisors if B // g >= 2]
    return max(two_step) if two_step else max(divisors)


def diffpool_forward(x, adj, params, *, graphs_per_step=None):
    """Batched DiffPool.forward: x (B,N,F), adj (B,N,N) -> (out (B,C), emb (B,H))."""
    B, N, F = x.shape
    H = params["wg1"].shape[1]
    C = params["wfc"].shape[1]
    assert H + C <= _LANES, "packed output row assumes hidden + num_classes <= 128"
    out_pad = _LANES

    slab, layout = _pack_weight_slab(params)
    R = slab.shape[0]

    G = graphs_per_step if graphs_per_step is not None else _pick_graphs_per_step(B)
    assert B % G == 0, "batch must be divisible by graphs_per_step"
    steps = B // G

    # Reshape so every non-squeezed block dim equals its full array dim.
    x4 = x.astype(jnp.float32).reshape(steps, G, N, F)
    adj4 = adj.astype(jnp.float32).reshape(steps, G, N, N)

    kernel = functools.partial(_diffpool_kernel, layout=layout,
                               hidden=H, n_cls=C, out_pad=out_pad)
    packed = pl.pallas_call(
        kernel,
        out_shape=jax.ShapeDtypeStruct((steps, G, out_pad), jnp.float32),
        grid=(steps,),
        in_specs=[
            pl.BlockSpec((None, G, N, F), lambda b: (b, 0, 0, 0)),  # G graphs' features
            pl.BlockSpec((None, G, N, N), lambda b: (b, 0, 0, 0)),  # G graphs' adjacency
            # Constant index_map -> slab block stays resident; no re-fetch per step.
            pl.BlockSpec((R, _LANES), lambda b: (0, 0)),
        ],
        out_specs=pl.BlockSpec((None, G, out_pad), lambda b: (b, 0, 0)),
        compiler_params=pltpu.CompilerParams(
            dimension_semantics=("parallel",)),                     # 2 TCs on v7x
        # TODO(synk): for large N add a tiled A@(XW) row-tile path (grid over node
        # row tiles, reduction axis last/"arbitrary") and an explicit
        # vmem_limit_bytes budget; the full (N,N) f32 block hits v7x's 64 MiB first.
    )(x4, adj4, slab)

    packed = packed.reshape(B, out_pad)
    emb = packed[:, :H]                                             # x_att_combine per graph
    out = packed[:, H:H + C]                                        # fc logits per graph
    return out, emb


# ----------------------------------------------------------------------------
# Pure-JAX reference (matches the PyTorch module math) for a correctness check
# ----------------------------------------------------------------------------
def _gcn_ref(x, adj, w, b):
    n = adj.shape[0]
    a = adj + jnp.eye(n, dtype=x.dtype)
    deg = jnp.sum(a, axis=1)
    d = jnp.where(deg > 0, deg ** -0.5, 0.0)
    norm_adj = a * d[:, None] * d[None, :]
    return jnp.maximum(norm_adj @ (x @ w) + b, 0.0)


def _pool_ref(x, adj, w_g, b_g, w_c, b_c):
    x_gnn = jnp.maximum(_gcn_ref(x, adj, w_g, b_g), 0.0)
    s = jax.nn.softmax(x_gnn @ w_c + b_c, axis=-1)
    return x_gnn, s.T @ x, s.T @ adj @ s


def diffpool_reference(x, adj, p):
    xg1, xa1, aa1 = _pool_ref(x, adj, p["wg1"], p["bg1"], p["wc1"], p["bc1"])
    xg2, xa2, aa2 = _pool_ref(xa1, aa1, p["wg2"], p["bg2"], p["wc2"], p["bc2"])
    xg3 = jnp.maximum(_gcn_ref(xa2, aa2, p["wg3"], p["bg3"]), 0.0)
    x1 = jnp.mean(jnp.maximum(xg1, 0.0), axis=0, keepdims=True)
    x2 = jnp.mean(jnp.maximum(xg2, 0.0), axis=0, keepdims=True)
    x3 = jnp.mean(xg3, axis=0, keepdims=True)
    emb = jnp.mean(jnp.stack([x1, x2, x3]), axis=0)                # (1, H)
    out = emb.reshape(-1) @ p["wfc"] + p["bfc"].reshape(-1)        # (num_classes,)
    return out, emb


if __name__ == "__main__":
    # Small shapes consistent with the module's forward, plus a small batch:
    B, N, in_channels, hidden, num_clusters, num_classes = 4, 16, 8, 32, 8, 4
    C1 = ceil(num_clusters / 2)   # pool1 clusters = 4
    C2 = ceil(num_clusters / 4)   # pool2 clusters = 2

    key = jax.random.PRNGKey(0)
    ks = jax.random.split(key, 8)

    x = jax.random.normal(ks[0], (B, N, in_channels), dtype=jnp.float32)
    # symmetric binary adjacency per graph, zero diagonal
    a = (jax.random.uniform(ks[1], (B, N, N)) < 0.3).astype(jnp.float32)
    adj = jnp.clip(a + jnp.swapaxes(a, -1, -2), 0.0, 1.0)
    adj = adj * (1.0 - jnp.eye(N, dtype=jnp.float32))

    params = {
        # pool1: GCNLayer(in_channels, hidden) + Linear(hidden, C1)
        "wg1": 0.1 * jax.random.normal(ks[2], (in_channels, hidden), jnp.float32),
        "bg1": jnp.zeros((1, hidden), jnp.float32),
        "wc1": 0.1 * jax.random.normal(ks[3], (hidden, C1), jnp.float32),
        "bc1": jnp.zeros((1, C1), jnp.float32),
        # pool2: GCNLayer(in_channels, hidden) + Linear(hidden, C2)
        "wg2": 0.1 * jax.random.normal(ks[4], (in_channels, hidden), jnp.float32),
        "bg2": jnp.zeros((1, hidden), jnp.float32),
        "wc2": 0.1 * jax.random.normal(ks[5], (hidden, C2), jnp.float32),
        "bc2": jnp.zeros((1, C2), jnp.float32),
        # gcn1: GCNLayer(in_channels, hidden)
        "wg3": 0.1 * jax.random.normal(ks[6], (in_channels, hidden), jnp.float32),
        "bg3": jnp.zeros((1, hidden), jnp.float32),
        # fc: Linear(hidden, num_classes)
        "wfc": 0.1 * jax.random.normal(ks[7], (hidden, num_classes), jnp.float32),
        "bfc": jnp.zeros((1, num_classes), jnp.float32),
    }

    out, emb = diffpool_forward(x, adj, params)
    out = jax.block_until_ready(out)
    emb = jax.block_until_ready(emb)

    out_ref, emb_ref = jax.vmap(lambda xg, ag: diffpool_reference(xg, ag, params))(x, adj)
    emb_ref = emb_ref.reshape(B, hidden)

    # Tolerance covers the approximate EUP reciprocal used for the softmax denom.
    assert jnp.allclose(out, out_ref, atol=1e-2, rtol=1e-2), (out, out_ref)
    assert jnp.allclose(emb, emb_ref, atol=1e-2, rtol=1e-2)

    print("KERNEL_OK")
</pallas_src>

<mosaic_0001>
module attributes {stable_mosaic.version = 11 : i64} {
  func.func @_diffpool_kernel(%arg0: i32, %arg1: memref<1x2x16x8xf32, #tpu.memory_space<vmem>>, %arg2: memref<1x2x16x16xf32, #tpu.memory_space<vmem>>, %arg3: memref<168x128xf32, #tpu.memory_space<vmem>>, %arg4: memref<1x2x128xf32, #tpu.memory_space<vmem>>) attributes {dimension_semantics = [#tpu.dimension_semantics<parallel>], iteration_bounds = array<i64: 2>, scalar_prefetch = 0 : i64, scratch_operands = 0 : i64, tpu.core_type = #tpu.core_type<tc>, window_params = [{transform_indices = @transform_0, window_bounds = array<i64: 1, 2, 16, 8>}, {transform_indices = @transform_1, window_bounds = array<i64: 1, 2, 16, 16>}, {pipeline_mode = #tpu.pipeline_mode<synchronous>, transform_indices = @transform_2, window_bounds = array<i64: 168, 128>}, {transform_indices = @transform_3, window_bounds = array<i64: 1, 2, 128>}]} {
    %c0 = arith.constant 0 : index
    %c0_0 = arith.constant 0 : index
    %0 = vector.load %arg3[%c0, %c0_0] : memref<168x128xf32, #tpu.memory_space<vmem>>, vector<8x32xf32>
    %c8 = arith.constant 8 : index
    %c0_1 = arith.constant 0 : index
    %1 = vector.load %arg3[%c8, %c0_1] : memref<168x128xf32, #tpu.memory_space<vmem>>, vector<1x32xf32>
    %c16 = arith.constant 16 : index
    %c0_2 = arith.constant 0 : index
    %2 = vector.load %arg3[%c16, %c0_2] : memref<168x128xf32, #tpu.memory_space<vmem>>, vector<32x4xf32>
    %c48 = arith.constant 48 : index
    %c0_3 = arith.constant 0 : index
    %3 = vector.load %arg3[%c48, %c0_3] : memref<168x128xf32, #tpu.memory_space<vmem>>, vector<1x4xf32>
    %c56 = arith.constant 56 : index
    %c0_4 = arith.constant 0 : index
    %4 = vector.load %arg3[%c56, %c0_4] : memref<168x128xf32, #tpu.memory_space<vmem>>, vector<8x32xf32>
    %c64 = arith.constant 64 : index
    %c0_5 = arith.constant 0 : index
    %5 = vector.load %arg3[%c64, %c0_5] : memref<168x128xf32, #tpu.memory_space<vmem>>, vector<1x32xf32>
    %c72 = arith.constant 72 : index
    %c0_6 = arith.constant 0 : index
    %6 = vector.load %arg3[%c72, %c0_6] : memref<168x128xf32, #tpu.memory_space<vmem>>, vector<32x2xf32>
    %c104 = arith.constant 104 : index
    %c0_7 = arith.constant 0 : index
    %7 = vector.load %arg3[%c104, %c0_7] : memref<168x128xf32, #tpu.memory_space<vmem>>, vector<1x2xf32>
    %c112 = arith.constant 112 : index
    %c0_8 = arith.constant 0 : index
    %8 = vector.load %arg3[%c112, %c0_8] : memref<168x128xf32, #tpu.memory_space<vmem>>, vector<8x32xf32>
    %c120 = arith.constant 120 : index
    %c0_9 = arith.constant 0 : index
    %9 = vector.load %arg3[%c120, %c0_9] : memref<168x128xf32, #tpu.memory_space<vmem>>, vector<1x32xf32>
    %c128 = arith.constant 128 : index
    %c0_10 = arith.constant 0 : index
    %10 = vector.load %arg3[%c128, %c0_10] : memref<168x128xf32, #tpu.memory_space<vmem>>, vector<32x4xf32>
    %c160 = arith.constant 160 : index
    %c0_11 = arith.constant 0 : index
    %11 = vector.load %arg3[%c160, %c0_11] : memref<168x128xf32, #tpu.memory_space<vmem>>, vector<1x4xf32>
    %c0_12 = arith.constant 0 : index
    %c0_13 = arith.constant 0 : index
    %c0_14 = arith.constant 0 : index
    %c0_15 = arith.constant 0 : index
    %12 = vector.load %arg1[%c0_12, %c0_13, %c0_14, %c0_15] : memref<1x2x16x8xf32, #tpu.memory_space<vmem>>, vector<1x2x16x8xf32>
    %13 = vector.shape_cast %12 : vector<1x2x16x8xf32> to vector<2x16x8xf32>
    %14 = vector.shape_cast %13 : vector<2x16x8xf32> to vector<32x8xf32>
    %cst = arith.constant dense<0.000000e+00> : vector<32x32xf32>
    %15 = tpu.matmul %14, %0, %cst {dimension_numbers = #tpu.dot_dimension_numbers<[1], [0], [0], [1], [0, 0, 1, 1], [], []>} : vector<32x8xf32>, vector<8x32xf32>, vector<32x32xf32> -> vector<32x32xf32>
    %16 = vector.shape_cast %15 : vector<32x32xf32> to vector<2x16x32xf32>
    %cst_16 = arith.constant 0.000000e+00 : f32
    %17 = vector.broadcast %cst_16 : f32 to vector<1x92xf32>
    %18 = vector.extract_strided_slice %13 {offsets = [0, 0, 0], sizes = [1, 16, 8], strides = [1, 1, 1]} : vector<2x16x8xf32> to vector<1x16x8xf32>
    %19 = vector.shape_cast %18 : vector<1x16x8xf32> to vector<16x8xf32>
    %c0_17 = arith.constant 0 : index
    %c0_18 = arith.constant 0 : index
    %c0_19 = arith.constant 0 : index
    %c0_20 = arith.constant 0 : index
    %20 = vector.load %arg2[%c0_17, %c0_18, %c0_19, %c0_20] : memref<1x2x16x16xf32, #tpu.memory_space<vmem>>, vector<1x1x16x16xf32>
    %21 = vector.shape_cast %20 : vector<1x1x16x16xf32> to vector<16x16xf32>
    %22 = vector.extract_strided_slice %16 {offsets = [0, 0, 0], sizes = [1, 16, 32], strides = [1, 1, 1]} : vector<2x16x32xf32> to vector<1x16x32xf32>
    %23 = vector.shape_cast %22 : vector<1x16x32xf32> to vector<16x32xf32>
    %cst_21 = arith.constant dense<0.000000e+00> : vector<16xf32>
    %24 = vector.multi_reduction <add>, %21, %cst_21 [1] : vector<16x16xf32> to vector<16xf32>
    %25 = vector.shape_cast %24 : vector<16xf32> to vector<16x1xf32>
    %cst_22 = arith.constant 1.000000e+00 : f32
    %26 = vector.broadcast %cst_22 : f32 to vector<16x1xf32>
    %27 = arith.addf %25, %26 : vector<16x1xf32>
    %28 = math.rsqrt %27 : vector<16x1xf32>
    %29 = vector.broadcast %28 : vector<16x1xf32> to vector<16x32xf32>
    %30 = arith.mulf %29, %23 : vector<16x32xf32>
    %cst_23 = arith.constant dense<0.000000e+00> : vector<16x32xf32>
    %31 = tpu.matmul %21, %30, %cst_23 {dimension_numbers = #tpu.dot_dimension_numbers<[1], [0], [0], [1], [0, 0, 1, 1], [], []>} : vector<16x16xf32>, vector<16x32xf32>, vector<16x32xf32> -> vector<16x32xf32>
    %32 = arith.addf %31, %30 : vector<16x32xf32>
    %33 = vector.broadcast %28 : vector<16x1xf32> to vector<16x32xf32>
    %34 = arith.mulf %33, %32 : vector<16x32xf32>
    %35 = vector.broadcast %1 : vector<1x32xf32> to vector<16x32xf32>
    %36 = arith.addf %34, %35 : vector<16x32xf32>
    %cst_24 = arith.constant 0.000000e+00 : f32
    %37 = vector.broadcast %cst_24 : f32 to vector<16x32xf32>
    %38 = arith.maximumf %36, %37 : vector<16x32xf32>
    %cst_25 = arith.constant dense<0.000000e+00> : vector<16x4xf32>
    %39 = tpu.matmul %38, %2, %cst_25 {dimension_numbers = #tpu.dot_dimension_numbers<[1], [0], [0], [1], [0, 0, 1, 1], [], []>} : vector<16x32xf32>, vector<32x4xf32>, vector<16x4xf32> -> vector<16x4xf32>
    %40 = vector.broadcast %3 : vector<1x4xf32> to vector<16x4xf32>
    %41 = arith.addf %39, %40 : vector<16x4xf32>
    %cst_26 = arith.constant dense<0xFF800000> : vector<16xf32>
    %42 = vector.multi_reduction <maximumf>, %41, %cst_26 [1] : vector<16x4xf32> to vector<16xf32>
    %43 = vector.shape_cast %42 : vector<16xf32> to vector<16x1xf32>
    %44 = vector.broadcast %43 : vector<16x1xf32> to vector<16x4xf32>
    %45 = arith.subf %41, %44 : vector<16x4xf32>
    %46 = math.exp %45 : vector<16x4xf32>
    %cst_27 = arith.constant dense<0.000000e+00> : vector<16xf32>
    %47 = vector.multi_reduction <add>, %46, %cst_27 [1] : vector<16x4xf32> to vector<16xf32>
    %48 = vector.shape_cast %47 : vector<16xf32> to vector<16x1xf32>
    %49 = tpu.reciprocal %48 {approx = true} : vector<16x1xf32> -> vector<16x1xf32>
    %50 = vector.broadcast %49 : vector<16x1xf32> to vector<16x4xf32>
    %51 = arith.mulf %46, %50 : vector<16x4xf32>
    %cst_28 = arith.constant dense<0.000000e+00> : vector<4x8xf32>
    %52 = tpu.matmul %51, %19, %cst_28 {dimension_numbers = #tpu.dot_dimension_numbers<[0], [0], [1], [1], [0, 1, 1, 1], [], []>} : vector<16x4xf32>, vector<16x8xf32>, vector<4x8xf32> -> vector<4x8xf32>
    %cst_29 = arith.constant dense<0.000000e+00> : vector<4x16xf32>
    %53 = tpu.matmul %51, %21, %cst_29 {dimension_numbers = #tpu.dot_dimension_numbers<[0], [0], [1], [1], [0, 1, 1, 1], [], []>} : vector<16x4xf32>, vector<16x16xf32>, vector<4x16xf32> -> vector<4x16xf32>
    %cst_30 = arith.constant dense<0.000000e+00> : vector<4x4xf32>
    %54 = tpu.matmul %53, %51, %cst_30 {dimension_numbers = #tpu.dot_dimension_numbers<[1], [0], [0], [1], [0, 0, 1, 1], [], []>} : vector<4x16xf32>, vector<16x4xf32>, vector<4x4xf32> -> vector<4x4xf32>
    %cst_31 = arith.constant dense<0.000000e+00> : vector<4x32xf32>
    %55 = tpu.matmul %52, %4, %cst_31 {dimension_numbers = #tpu.dot_dimension_numbers<[1], [0], [0], [1], [0, 0, 1, 1], [], []>} : vector<4x8xf32>, vector<8x32xf32>, vector<4x32xf32> -> vector<4x32xf32>
    %cst_32 = arith.constant dense<0.000000e+00> : vector<4xf32>
    %56 = vector.multi_reduction <add>, %54, %cst_32 [1] : vector<4x4xf32> to vector<4xf32>
    %57 = vector.shape_cast %56 : vector<4xf32> to vector<4x1xf32>
    %cst_33 = arith.constant 1.000000e+00 : f32
    %58 = vector.broadcast %cst_33 : f32 to vector<4x1xf32>
    %59 = arith.addf %57, %58 : vector<4x1xf32>
    %60 = math.rsqrt %59 : vector<4x1xf32>
    %61 = vector.broadcast %60 : vector<4x1xf32> to vector<4x32xf32>
    %62 = arith.mulf %61, %55 : vector<4x32xf32>
    %cst_34 = arith.constant dense<0.000000e+00> : vector<4x32xf32>
    %63 = tpu.matmul %54, %62, %cst_34 {dimension_numbers = #tpu.dot_dimension_numbers<[1], [0], [0], [1], [0, 0, 1, 1], [], []>} : vector<4x4xf32>, vector<4x32xf32>, vector<4x32xf32> -> vector<4x32xf32>
    %64 = arith.addf %63, %62 : vector<4x32xf32>
    %65 = vector.broadcast %60 : vector<4x1xf32> to vector<4x32xf32>
    %66 = arith.mulf %65, %64 : vector<4x32xf32>
    %67 = vector.broadcast %5 : vector<1x32xf32> to vector<4x32xf32>
    %68 = arith.addf %66, %67 : vector<4x32xf32>
    %cst_35 = arith.constant 0.000000e+00 : f32
    %69 = vector.broadcast %cst_35 : f32 to vector<4x32xf32>
    %70 = arith.maximumf %68, %69 : vector<4x32xf32>
    %cst_36 = arith.constant dense<0.000000e+00> : vector<4x2xf32>
    %71 = tpu.matmul %70, %6, %cst_36 {dimension_numbers = #tpu.dot_dimension_numbers<[1], [0], [0], [1], [0, 0, 1, 1], [], []>} : vector<4x32xf32>, vector<32x2xf32>, vector<4x2xf32> -> vector<4x2xf32>
    %72 = vector.broadcast %7 : vector<1x2xf32> to vector<4x2xf32>
    %73 = arith.addf %71, %72 : vector<4x2xf32>
    %cst_37 = arith.constant dense<0xFF800000> : vector<4xf32>
    %74 = vector.multi_reduction <maximumf>, %73, %cst_37 [1] : vector<4x2xf32> to vector<4xf32>
    %75 = vector.shape_cast %74 : vector<4xf32> to vector<4x1xf32>
    %76 = vector.broadcast %75 : vector<4x1xf32> to vector<4x2xf32>
    %77 = arith.subf %73, %76 : vector<4x2xf32>
    %78 = math.exp %77 : vector<4x2xf32>
    %cst_38 = arith.constant dense<0.000000e+00> : vector<4xf32>
    %79 = vector.multi_reduction <add>, %78, %cst_38 [1] : vector<4x2xf32> to vector<4xf32>
    %80 = vector.shape_cast %79 : vector<4xf32> to vector<4x1xf32>
    %81 = tpu.reciprocal %80 {approx = true} : vector<4x1xf32> -> vector<4x1xf32>
    %82 = vector.broadcast %81 : vector<4x1xf32> to vector<4x2xf32>
    %83 = arith.mulf %78, %82 : vector<4x2xf32>
    %cst_39 = arith.constant dense<0.000000e+00> : vector<2x8xf32>
    %84 = tpu.matmul %83, %52, %cst_39 {dimension_numbers = #tpu.dot_dimension_numbers<[0], [0], [1], [1], [0, 1, 1, 1], [], []>} : vector<4x2xf32>, vector<4x8xf32>, vector<2x8xf32> -> vector<2x8xf32>
    %cst_40 = arith.constant dense<0.000000e+00> : vector<2x4xf32>
    %85 = tpu.matmul %83, %54, %cst_40 {dimension_numbers = #tpu.dot_dimension_numbers<[0], [0], [1], [1], [0, 1, 1, 1], [], []>} : vector<4x2xf32>, vector<4x4xf32>, vector<2x4xf32> -> vector<2x4xf32>
    %cst_41 = arith.constant dense<0.000000e+00> : vector<2x2xf32>
    %86 = tpu.matmul %85, %83, %cst_41 {dimension_numbers = #tpu.dot_dimension_numbers<[1], [0], [0], [1], [0, 0, 1, 1], [], []>} : vector<2x4xf32>, vector<4x2xf32>, vector<2x2xf32> -> vector<2x2xf32>
    %cst_42 = arith.constant dense<0.000000e+00> : vector<2x32xf32>
    %87 = tpu.matmul %84, %8, %cst_42 {dimension_numbers = #tpu.dot_dimension_numbers<[1], [0], [0], [1], [0, 0, 1, 1], [], []>} : vector<2x8xf32>, vector<8x32xf32>, vector<2x32xf32> -> vector<2x32xf32>
    %cst_43 = arith.constant dense<0.000000e+00> : vector<2xf32>
    %88 = vector.multi_reduction <add>, %86, %cst_43 [1] : vector<2x2xf32> to vector<2xf32>
    %89 = vector.shape_cast %88 : vector<2xf32> to vector<2x1xf32>
    %cst_44 = arith.constant 1.000000e+00 : f32
    %90 = vector.broadcast %cst_44 : f32 to vector<2x1xf32>
    %91 = arith.addf %89, %90 : vector<2x1xf32>
    %92 = math.rsqrt %91 : vector<2x1xf32>
    %93 = vector.broadcast %92 : vector<2x1xf32> to vector<2x32xf32>
    %94 = arith.mulf %93, %87 : vector<2x32xf32>
    %cst_45 = arith.constant dense<0.000000e+00> : vector<2x32xf32>
    %95 = tpu.matmul %86, %94, %cst_45 {dimension_numbers = #tpu.dot_dimension_numbers<[1], [0], [0], [1], [0, 0, 1, 1], [], []>} : vector<2x2xf32>, vector<2x32xf32>, vector<2x32xf32> -> vector<2x32xf32>
    %96 = arith.addf %95, %94 : vector<2x32xf32>
    %97 = vector.broadcast %92 : vector<2x1xf32> to vector<2x32xf32>
    %98 = arith.mulf %97, %96 : vector<2x32xf32>
    %99 = vector.broadcast %9 : vector<1x32xf32> to vector<2x32xf32>
    %100 = arith.addf %98, %99 : vector<2x32xf32>
    %cst_46 = arith.constant 0.000000e+00 : f32
    %101 = vector.broadcast %cst_46 : f32 to vector<2x32xf32>
    %102 = arith.maximumf %100, %101 : vector<2x32xf32>
    %cst_47 = arith.constant dense<0.000000e+00> : vector<32xf32>
    %103 = vector.multi_reduction <add>, %38, %cst_47 [0] : vector<16x32xf32> to vector<32xf32>
    %104 = vector.shape_cast %103 : vector<32xf32> to vector<1x32xf32>
    %cst_48 = arith.constant 1.600000e+01 : f32
    %105 = vector.broadcast %cst_48 : f32 to vector<1x32xf32>
    %106 = arith.divf %104, %105 : vector<1x32xf32>
    %cst_49 = arith.constant dense<0.000000e+00> : vector<32xf32>
    %107 = vector.multi_reduction <add>, %70, %cst_49 [0] : vector<4x32xf32> to vector<32xf32>
    %108 = vector.shape_cast %107 : vector<32xf32> to vector<1x32xf32>
    %cst_50 = arith.constant 4.000000e+00 : f32
    %109 = vector.broadcast %cst_50 : f32 to vector<1x32xf32>
    %110 = arith.divf %108, %109 : vector<1x32xf32>
    %111 = arith.addf %106, %110 : vector<1x32xf32>
    %cst_51 = arith.constant dense<0.000000e+00> : vector<32xf32>
    %112 = vector.multi_reduction <add>, %102, %cst_51 [0] : vector<2x32xf32> to vector<32xf32>
    %113 = vector.shape_cast %112 : vector<32xf32> to vector<1x32xf32>
    %cst_52 = arith.constant 2.000000e+00 : f32
    %114 = vector.broadcast %cst_52 : f32 to vector<1x32xf32>
    %115 = arith.divf %113, %114 : vector<1x32xf32>
    %116 = arith.addf %111, %115 : vector<1x32xf32>
    %cst_53 = arith.constant 0.333333343 : f32
    %117 = vector.broadcast %cst_53 : f32 to vector<1x32xf32>
    %118 = arith.mulf %116, %117 : vector<1x32xf32>
    %cst_54 = arith.constant dense<0.000000e+00> : vector<1x4xf32>
    %119 = tpu.matmul %118, %10, %cst_54 {dimension_numbers = #tpu.dot_dimension_numbers<[1], [0], [0], [1], [0, 0, 1, 1], [], []>} : vector<1x32xf32>, vector<32x4xf32>, vector<1x4xf32> -> vector<1x4xf32>
    %120 = arith.addf %119, %11 : vector<1x4xf32>
    %121 = tpu.concatenate %118, %120, %17 in 1 : vector<1x32xf32>, vector<1x4xf32>, vector<1x92xf32> -> vector<1x128xf32>
    %122 = vector.extract_strided_slice %13 {offsets = [1, 0, 0], sizes = [1, 16, 8], strides = [1, 1, 1]} : vector<2x16x8xf32> to vector<1x16x8xf32>
    %123 = vector.shape_cast %122 : vector<1x16x8xf32> to vector<16x8xf32>
    %c0_55 = arith.constant 0 : index
    %c1 = arith.constant 1 : index
    %c0_56 = arith.constant 0 : index
    %c0_57 = arith.constant 0 : index
    %124 = vector.load %arg2[%c0_55, %c1, %c0_56, %c0_57] : memref<1x2x16x16xf32, #tpu.memory_space<vmem>>, vector<1x1x16x16xf32>
    %125 = vector.shape_cast %124 : vector<1x1x16x16xf32> to vector<16x16xf32>
    %126 = vector.extract_strided_slice %16 {offsets = [1, 0, 0], sizes = [1, 16, 32], strides = [1, 1, 1]} : vector<2x16x32xf32> to vector<1x16x32xf32>
    %127 = vector.shape_cast %126 : vector<1x16x32xf32> to vector<16x32xf32>
    %cst_58 = arith.constant dense<0.000000e+00> : vector<16xf32>
    %128 = vector.multi_reduction <add>, %125, %cst_58 [1] : vector<16x16xf32> to vector<16xf32>
    %129 = vector.shape_cast %128 : vector<16xf32> to vector<16x1xf32>
    %cst_59 = arith.constant 1.000000e+00 : f32
    %130 = vector.broadcast %cst_59 : f32 to vector<16x1xf32>
    %131 = arith.addf %129, %130 : vector<16x1xf32>
    %132 = math.rsqrt %131 : vector<16x1xf32>
    %133 = vector.broadcast %132 : vector<16x1xf32> to vector<16x32xf32>
    %134 = arith.mulf %133, %127 : vector<16x32xf32>
    %cst_60 = arith.constant dense<0.000000e+00> : vector<16x32xf32>
    %135 = tpu.matmul %125, %134, %cst_60 {dimension_numbers = #tpu.dot_dimension_numbers<[1], [0], [0], [1], [0, 0, 1, 1], [], []>} : vector<16x16xf32>, vector<16x32xf32>, vector<16x32xf32> -> vector<16x32xf32>
    %136 = arith.addf %135, %134 : vector<16x32xf32>
    %137 = vector.broadcast %132 : vector<16x1xf32> to vector<16x32xf32>
    %138 = arith.mulf %137, %136 : vector<16x32xf32>
    %139 = vector.broadcast %1 : vector<1x32xf32> to vector<16x32xf32>
    %140 = arith.addf %138, %139 : vector<16x32xf32>
    %cst_61 = arith.constant 0.000000e+00 : f32
    %141 = vector.broadcast %cst_61 : f32 to vector<16x32xf32>
    %142 = arith.maximumf %140, %141 : vector<16x32xf32>
    %cst_62 = arith.constant dense<0.000000e+00> : vector<16x4xf32>
    %143 = tpu.matmul %142, %2, %cst_62 {dimension_numbers = #tpu.dot_dimension_numbers<[1], [0], [0], [1], [0, 0, 1, 1], [], []>} : vector<16x32xf32>, vector<32x4xf32>, vector<16x4xf32> -> vector<16x4xf32>
    %144 = vector.broadcast %3 : vector<1x4xf32> to vector<16x4xf32>
    %145 = arith.addf %143, %144 : vector<16x4xf32>
    %cst_63 = arith.constant dense<0xFF800000> : vector<16xf32>
    %146 = vector.multi_reduction <maximumf>, %145, %cst_63 [1] : vector<16x4xf32> to vector<16xf32>
    %147 = vector.shape_cast %146 : vector<16xf32> to vector<16x1xf32>
    %148 = vector.broadcast %147 : vector<16x1xf32> to vector<16x4xf32>
    %149 = arith.subf %145, %148 : vector<16x4xf32>
    %150 = math.exp %149 : vector<16x4xf32>
    %cst_64 = arith.constant dense<0.000000e+00> : vector<16xf32>
    %151 = vector.multi_reduction <add>, %150, %cst_64 [1] : vector<16x4xf32> to vector<16xf32>
    %152 = vector.shape_cast %151 : vector<16xf32> to vector<16x1xf32>
    %153 = tpu.reciprocal %152 {approx = true} : vector<16x1xf32> -> vector<16x1xf32>
    %154 = vector.broadcast %153 : vector<16x1xf32> to vector<16x4xf32>
    %155 = arith.mulf %150, %154 : vector<16x4xf32>
    %cst_65 = arith.constant dense<0.000000e+00> : vector<4x8xf32>
    %156 = tpu.matmul %155, %123, %cst_65 {dimension_numbers = #tpu.dot_dimension_numbers<[0], [0], [1], [1], [0, 1, 1, 1], [], []>} : vector<16x4xf32>, vector<16x8xf32>, vector<4x8xf32> -> vector<4x8xf32>
    %cst_66 = arith.constant dense<0.000000e+00> : vector<4x16xf32>
    %157 = tpu.matmul %155, %125, %cst_66 {dimension_numbers = #tpu.dot_dimension_numbers<[0], [0], [1], [1], [0, 1, 1, 1], [], []>} : vector<16x4xf32>, vector<16x16xf32>, vector<4x16xf32> -> vector<4x16xf32>
    %cst_67 = arith.constant dense<0.000000e+00> : vector<4x4xf32>
    %158 = tpu.matmul %157, %155, %cst_67 {dimension_numbers = #tpu.dot_dimension_numbers<[1], [0], [0], [1], [0, 0, 1, 1], [], []>} : vector<4x16xf32>, vector<16x4xf32>, vector<4x4xf32> -> vector<4x4xf32>
    %cst_68 = arith.constant dense<0.000000e+00> : vector<4x32xf32>
    %159 = tpu.matmul %156, %4, %cst_68 {dimension_numbers = #tpu.dot_dimension_numbers<[1], [0], [0], [1], [0, 0, 1, 1], [], []>} : vector<4x8xf32>, vector<8x32xf32>, vector<4x32xf32> -> vector<4x32xf32>
    %cst_69 = arith.constant dense<0.000000e+00> : vector<4xf32>
    %160 = vector.multi_reduction <add>, %158, %cst_69 [1] : vector<4x4xf32> to vector<4xf32>
    %161 = vector.shape_cast %160 : vector<4xf32> to vector<4x1xf32>
    %cst_70 = arith.constant 1.000000e+00 : f32
    %162 = vector.broadcast %cst_70 : f32 to vector<4x1xf32>
    %163 = arith.addf %161, %162 : vector<4x1xf32>
    %164 = math.rsqrt %163 : vector<4x1xf32>
    %165 = vector.broadcast %164 : vector<4x1xf32> to vector<4x32xf32>
    %166 = arith.mulf %165, %159 : vector<4x32xf32>
    %cst_71 = arith.constant dense<0.000000e+00> : vector<4x32xf32>
    %167 = tpu.matmul %158, %166, %cst_71 {dimension_numbers = #tpu.dot_dimension_numbers<[1], [0], [0], [1], [0, 0, 1, 1], [], []>} : vector<4x4xf32>, vector<4x32xf32>, vector<4x32xf32> -> vector<4x32xf32>
    %168 = arith.addf %167, %166 : vector<4x32xf32>
    %169 = vector.broadcast %164 : vector<4x1xf32> to vector<4x32xf32>
    %170 = arith.mulf %169, %168 : vector<4x32xf32>
    %171 = vector.broadcast %5 : vector<1x32xf32> to vector<4x32xf32>
    %172 = arith.addf %170, %171 : vector<4x32xf32>
    %cst_72 = arith.constant 0.000000e+00 : f32
    %173 = vector.broadcast %cst_72 : f32 to vector<4x32xf32>
    %174 = arith.maximumf %172, %173 : vector<4x32xf32>
    %cst_73 = arith.constant dense<0.000000e+00> : vector<4x2xf32>
    %175 = tpu.matmul %174, %6, %cst_73 {dimension_numbers = #tpu.dot_dimension_numbers<[1], [0], [0], [1], [0, 0, 1, 1], [], []>} : vector<4x32xf32>, vector<32x2xf32>, vector<4x2xf32> -> vector<4x2xf32>
    %176 = vector.broadcast %7 : vector<1x2xf32> to vector<4x2xf32>
    %177 = arith.addf %175, %176 : vector<4x2xf32>
    %cst_74 = arith.constant dense<0xFF800000> : vector<4xf32>
    %178 = vector.multi_reduction <maximumf>, %177, %cst_74 [1] : vector<4x2xf32> to vector<4xf32>
    %179 = vector.shape_cast %178 : vector<4xf32> to vector<4x1xf32>
    %180 = vector.broadcast %179 : vector<4x1xf32> to vector<4x2xf32>
    %181 = arith.subf %177, %180 : vector<4x2xf32>
    %182 = math.exp %181 : vector<4x2xf32>
    %cst_75 = arith.constant dense<0.000000e+00> : vector<4xf32>
    %183 = vector.multi_reduction <add>, %182, %cst_75 [1] : vector<4x2xf32> to vector<4xf32>
    %184 = vector.shape_cast %183 : vector<4xf32> to vector<4x1xf32>
    %185 = tpu.reciprocal %184 {approx = true} : vector<4x1xf32> -> vector<4x1xf32>
    %186 = vector.broadcast %185 : vector<4x1xf32> to vector<4x2xf32>
    %187 = arith.mulf %182, %186 : vector<4x2xf32>
    %cst_76 = arith.constant dense<0.000000e+00> : vector<2x8xf32>
    %188 = tpu.matmul %187, %156, %cst_76 {dimension_numbers = #tpu.dot_dimension_numbers<[0], [0], [1], [1], [0, 1, 1, 1], [], []>} : vector<4x2xf32>, vector<4x8xf32>, vector<2x8xf32> -> vector<2x8xf32>
    %cst_77 = arith.constant dense<0.000000e+00> : vector<2x4xf32>
    %189 = tpu.matmul %187, %158, %cst_77 {dimension_numbers = #tpu.dot_dimension_numbers<[0], [0], [1], [1], [0, 1, 1, 1], [], []>} : vector<4x2xf32>, vector<4x4xf32>, vector<2x4xf32> -> vector<2x4xf32>
    %cst_78 = arith.constant dense<0.000000e+00> : vector<2x2xf32>
    %190 = tpu.matmul %189, %187, %cst_78 {dimension_numbers = #tpu.dot_dimension_numbers<[1], [0], [0], [1], [0, 0, 1, 1], [], []>} : vector<2x4xf32>, vector<4x2xf32>, vector<2x2xf32> -> vector<2x2xf32>
    %cst_79 = arith.constant dense<0.000000e+00> : vector<2x32xf32>
    %191 = tpu.matmul %188, %8, %cst_79 {dimension_numbers = #tpu.dot_dimension_numbers<[1], [0], [0], [1], [0, 0, 1, 1], [], []>} : vector<2x8xf32>, vector<8x32xf32>, vector<2x32xf32> -> vector<2x32xf32>
    %cst_80 = arith.constant dense<0.000000e+00> : vector<2xf32>
    %192 = vector.multi_reduction <add>, %190, %cst_80 [1] : vector<2x2xf32> to vector<2xf32>
    %193 = vector.shape_cast %192 : vector<2xf32> to vector<2x1xf32>
    %cst_81 = arith.constant 1.000000e+00 : f32
    %194 = vector.broadcast %cst_81 : f32 to vector<2x1xf32>
    %195 = arith.addf %193, %194 : vector<2x1xf32>
    %196 = math.rsqrt %195 : vector<2x1xf32>
    %197 = vector.broadcast %196 : vector<2x1xf32> to vector<2x32xf32>
    %198 = arith.mulf %197, %191 : vector<2x32xf32>
    %cst_82 = arith.constant dense<0.000000e+00> : vector<2x32xf32>
    %199 = tpu.matmul %190, %198, %cst_82 {dimension_numbers = #tpu.dot_dimension_numbers<[1], [0], [0], [1], [0, 0, 1, 1], [], []>} : vector<2x2xf32>, vector<2x32xf32>, vector<2x32xf32> -> vector<2x32xf32>
    %200 = arith.addf %199, %198 : vector<2x32xf32>
    %201 = vector.broadcast %196 : vector<2x1xf32> to vector<2x32xf32>
    %202 = arith.mulf %201, %200 : vector<2x32xf32>
    %203 = vector.broadcast %9 : vector<1x32xf32> to vector<2x32xf32>
    %204 = arith.addf %202, %203 : vector<2x32xf32>
    %cst_83 = arith.constant 0.000000e+00 : f32
    %205 = vector.broadcast %cst_83 : f32 to vector<2x32xf32>
    %206 = arith.maximumf %204, %205 : vector<2x32xf32>
    %cst_84 = arith.constant dense<0.000000e+00> : vector<32xf32>
    %207 = vector.multi_reduction <add>, %142, %cst_84 [0] : vector<16x32xf32> to vector<32xf32>
    %208 = vector.shape_cast %207 : vector<32xf32> to vector<1x32xf32>
    %cst_85 = arith.constant 1.600000e+01 : f32
    %209 = vector.broadcast %cst_85 : f32 to vector<1x32xf32>
    %210 = arith.divf %208, %209 : vector<1x32xf32>
    %cst_86 = arith.constant dense<0.000000e+00> : vector<32xf32>
    %211 = vector.multi_reduction <add>, %174, %cst_86 [0] : vector<4x32xf32> to vector<32xf32>
    %212 = vector.shape_cast %211 : vector<32xf32> to vector<1x32xf32>
    %cst_87 = arith.constant 4.000000e+00 : f32
    %213 = vector.broadcast %cst_87 : f32 to vector<1x32xf32>
    %214 = arith.divf %212, %213 : vector<1x32xf32>
    %215 = arith.addf %210, %214 : vector<1x32xf32>
    %cst_88 = arith.constant dense<0.000000e+00> : vector<32xf32>
    %216 = vector.multi_reduction <add>, %206, %cst_88 [0] : vector<2x32xf32> to vector<32xf32>
    %217 = vector.shape_cast %216 : vector<32xf32> to vector<1x32xf32>
    %cst_89 = arith.constant 2.000000e+00 : f32
    %218 = vector.broadcast %cst_89 : f32 to vector<1x32xf32>
    %219 = arith.divf %217, %218 : vector<1x32xf32>
    %220 = arith.addf %215, %219 : vector<1x32xf32>
    %cst_90 = arith.constant 0.333333343 : f32
    %221 = vector.broadcast %cst_90 : f32 to vector<1x32xf32>
    %222 = arith.mulf %220, %221 : vector<1x32xf32>
    %cst_91 = arith.constant dense<0.000000e+00> : vector<1x4xf32>
    %223 = tpu.matmul %222, %10, %cst_91 {dimension_numbers = #tpu.dot_dimension_numbers<[1], [0], [0], [1], [0, 0, 1, 1], [], []>} : vector<1x32xf32>, vector<32x4xf32>, vector<1x4xf32> -> vector<1x4xf32>
    %224 = arith.addf %223, %11 : vector<1x4xf32>
    %225 = tpu.concatenate %222, %224, %17 in 1 : vector<1x32xf32>, vector<1x4xf32>, vector<1x92xf32> -> vector<1x128xf32>
    %226 = tpu.concatenate %121, %225 in 0 : vector<1x128xf32>, vector<1x128xf32> -> vector<2x128xf32>
    %c0_92 = arith.constant 0 : index
    %c0_93 = arith.constant 0 : index
    %c0_94 = arith.constant 0 : index
    %227 = vector.load %arg4[%c0_92, %c0_93, %c0_94] : memref<1x2x128xf32, #tpu.memory_space<vmem>>, vector<1x2x128xf32>
    %228 = vector.shape_cast %227 : vector<1x2x128xf32> to vector<2x128xf32>
    %229 = vector.shape_cast %226 : vector<2x128xf32> to vector<1x2x128xf32>
    tpu.vector_store %arg4[%c0_92, %c0_93, %c0_94], %229 {strides = array<i32>} : memref<1x2x128xf32, #tpu.memory_space<vmem>>, vector<1x2x128xf32>,
    return
  }
  func.func @transform_0(%arg0: i32) -> (i32, i32, i32, i32) {
    %c0_i32 = arith.constant 0 : i32
    %c0_i32_0 = arith.constant 0 : i32
    %c0_i32_1 = arith.constant 0 : i32
    %c0_i32_2 = arith.constant 0 : i32
    return %arg0, %c0_i32, %c0_i32_0, %c0_i32_1 : i32, i32, i32, i32
  }
  func.func @transform_1(%arg0: i32) -> (i32, i32, i32, i32) {
    %c0_i32 = arith.constant 0 : i32
    %c0_i32_0 = arith.constant 0 : i32
    %c0_i32_1 = arith.constant 0 : i32
    %c0_i32_2 = arith.constant 0 : i32
    return %arg0, %c0_i32, %c0_i32_0, %c0_i32_1 : i32, i32, i32, i32
  }
  func.func @transform_2(%arg0: i32) -> (i32, i32) {
    %c0_i32 = arith.constant 0 : i32
    %c0_i32_0 = arith.constant 0 : i32
    %c0_i32_1 = arith.constant 0 : i32
    return %c0_i32, %c0_i32_0 : i32, i32
  }
  func.func @transform_3(%arg0: i32) -> (i32, i32, i32) {
    %c0_i32 = arith.constant 0 : i32
    %c0_i32_0 = arith.constant 0 : i32
    %c0_i32_1 = arith.constant 0 : i32
    return %arg0, %c0_i32, %c0_i32_0 : i32, i32, i32
  }
}

</mosaic_0001>

<bundles_post_ra>
// kernel: tpu_custom_call.1
= control target key start
LH: loop header
LB: loop body
LE: loop exit
PB: predicated region body
PF: predicated region fallthrough
CT: control target
= control target key end

     0   :  { %8 = vsyncpa [#allocation3], 0  ;;  %s3919_s0 = inlined_call_operand.vmem [shape: f32[2,2,16,8], index: 0, kind: input, shape index: {}]   ;;  %s3920_s1 = inlined_call_operand.vmem [shape: f32[2,2,16,16], index: 1, kind: input, shape index: {}]   ;;  %s3921_s2 = inlined_call_operand.hbm [shape: f32[168,128], index: 2, kind: input, shape index: {}]   ;;  %s3922_s3 = inlined_call_operand.hbm [shape: f32[2,2,128], index: 3, kind: output, shape index: {}]  }
   0x1   :  { %9 = vsyncpa [#allocation4], 0 }
   0x2   :  { %11 = vsyncpa [#allocation4 + $0x1], 0  ;;  %s3471_s12 = smov 0   ;;  %s3473_s13 = smov 0  }
   0x3   :  { %s3475_s14 = smov 0   ;;  %s3477_s15 = smov 0  }
   0x4 LB: > { %s3492_s16 = sadd.s32 4294967295, %s3442_s15   ;;  %s2896_s17 = sadd.s32 4294967294, %s3442_s15   ;;  %s3442_s15 = sphi %s3477_s15, %s3930_s15   ;;  %s3438_s14 = sphi %s3475_s14, %s3929_s14   ;;  %s3434_s13 = sphi %s3473_s13, %s3928_s13   ;;  %s3430_s12 = sphi %s3471_s12, %s3927_s12  }
   0x5   : > { %s3496_s18 = sadd.s32 1, %s3442_s15   ;;  %s97_s19 = sadd.s32 1, %s3438_s14 }
   0x6   : > { %s94_s20 = ssub.s32 %s3442_s15, %s3496_s18  ;;  %p107_p0 = scmp.ne.s32.totalorder %s3438_s14, %s3434_s13 }
   0x7   : > { %p95_p1 = scmp.eq.s32.totalorder %s94_s20, 0  ;;  %p108_p2 = scmp.eq.s32.totalorder %s3492_s16, 1 }
   0x8   : > { %p113_p3 = scmp.ne.s32.totalorder %s3434_s13, %s3430_s12  ;;  %p114_p4 = scmp.eq.s32.totalorder %s2896_s17, 1 }
   0x9   : > { %s3507_s21 = scalar_select %p95_p1, %s3438_s14, %s97_s19  }
   0xa   : > { %p3509_p5 = por %p108_p2, %p107_p0  ;;  %p3513_p6 = por %p114_p4, %p113_p3 }
   0xb   : > { %p2897_p7 = scmp.ge.s32.totalorder %s3442_s15, 1  ;;  %p121_p8 = scmp.lt.s32.totalorder %s3442_s15, 3 }
   0xc   : > { %s3924_s23 = scalar_select %p3513_p6, 1, 0 }
   0xd   : > { %p3271_p9 = scmp.eq.s32.totalorder %s3492_s16, 0  ;;  %p3520_p10 = pnand %p2897_p7, %p121_p8 }
   0xe   : > { %s3444_s25 = smov [#allocation2]  }
   0xf   : > { %s133_s26 = sshll.u32 %s3444_s25, 4  ;;  %p3263_p11 = pneg %p3520_p10  ;;  %s134_s26 = int_to_ptr.vmem [resolvable:$true] %s133_s26 }
  0x10   : > { %s3363_s27 = scalar_lea.vmem %s134_s26, 2688  ;;  %p3371_p3 = scmp.lt.s32.totalorder %s134_s26, %s134_s26 }
  0x11   : > { %p3264_p12 = pnand %p3271_p9, %p3263_p11  ;;  %p3364_p0 = scmp.ne.s32.totalorder %s134_s26, %s3363_s27 }
  0x12   : > { %p3372_p4 = scmp.lt.s32.totalorder %s3363_s27, %s3363_s27 }
  0x13   : > { %p3354_p13 = pneg %p3264_p12 }
  0x14   : > { %p3373_p6 = por %p3372_p4, %p3371_p3 }
  0x15   : > { %p3366_p1 = pnand %p3364_p0, %p3354_p13 }
  0x17   : > { %p3367_p2 = pneg %p3366_p1 }
  0x19   : > { %p3374_p7 = pnand %p3373_p6, %p3367_p2 }
  0x1b   : > { %3377 = shalt.err (!%p3374_p7)
}
  0x1c   : > { %s3445_s28 = smov 128   ;;  %s3446_s29 = smov 8  }
  0x1d   : > { %3266 = dma.hbm_to_vmem [thread:$0]  (!%p3264_p12), %s3921_s2, 2688, %s134_s26, [#allocation3], %s3445_s28, %s3445_s28, %s3446_s29  }
  0x1e   : > { %165 = sbr.rel (%p3520_p10) target bundleno = 6326 (0x18b6), region = 32 }
  0x23   : > { %3421 = dma.done.wait (%p3271_p9), [#allocation3], 2688  }
  0x24   : > { %3423 = vsyncadd (%p3271_p9), [#allocation3], 4294964608  ;;  %p194_p8 = scmp.lt.s32.totalorder %s3492_s16, 1  ;;  %vm229_vm0 = vcmask 64512   ;;  %vm329_vm1 = vcmask 130048   ;;  %v204_v0 = vld [vmem:[#allocation2] sm:$0xff] }
  0x25   : > { %3057 = vmatprep.subr.mxu0 %v204_v0  ;;  %v3573_v17 = vld [vmem:[#allocation2 + $0x28] sm:$0xff]  ;;  %v3585_v20 = vld [vmem:[#allocation2 + $0x20] sm:$0xff]  ;;  %v3591_v21 = vld [vmem:[#allocation2 + $0x18] sm:$0xff]  ;;  %vm437_vm2 = vcmask 261120   ;;  %vm519_vm3 = vcmask 31744   ;;  %v3447_v56 = vmov 0.0  }
  0x26   : > { %s195_s5 = scalar_select %p194_p8, %s3492_s16, 1  ;;  %3058 = vmatpush3.msra.mxu0 %v204_v0  ;;  %v3595_v22 = vld [vmem:[#allocation2 + $0x10] sm:$0xff]  ;;  %v3599_v25 = vld [vmem:[#allocation2 + $0x8] ss:$0 sm:$0xff]  ;;  %vm3448_vm4 = vmmov 0   ;;  %v3643_v0 = vld [vmem:[#allocation2 + $0x38] sm:$0xff] }
  0x27   : > { %3072 = vmatprep.subr.mxu0 %v3573_v17  ;;  %v3613_v40 = vld [vmem:[#allocation2 + $0x30] ss:$0 sm:$0xff]  ;;  %vm863_vm5 = vcmask 27648   ;;  %vm873_vm6 = vcmask 1043456   ;;  %vm1474_vm7 = vcmask 257024   ;;  %vm1031_vm8 = vcmask 11264  }
  0x28   : > { %s2964_s6 = sshll.u32 %s195_s5, 5  ;;  %vm1371_vm9 = vcmask 9216   ;;  %vm1382_vm10 = vcmask 1041408   ;;  %vm1378_vm11 = vcmask 15360   ;;  %vm1485_vm12 = vcmask 254976   ;;  %s3449_s19 = smov 32  }
  0x29   : > { %s3542_s9 = scalar_lea.vmem %s3919_s0, %s2964_s6  ;;  %s3547_s17 = scalar_lea.vmem %s3920_s1, %s2964_s6  ;;  %vm1575_vm13 = vcmask 293888   ;;  %vm2796_vm14 = vcmask 1040384  }
  0x2a   : > { %v3550_v1 = vld [vmem:[%s3542_s9] sm:$0xff]  ;;  %v3553_v2 = vld [vmem:[%s3542_s9 + $0x8] sm:$0xff]  ;;  %v3577_v18 = vld [vmem:[%s3542_s9 + $0x10] sm:$0xff]  ;;  %s191_s20 = sand.u32 1, %s3434_s13   ;;  %s2961_s25 = sshll.u32 %s3492_s16, 5 }
  0x2b   : > { %3059 = vmatprep.mubr.msk.f32.mxu0 %vm229_vm0, %v3550_v1  ;;  %v3558_v3 = vld [vmem:[%s3547_s17 + $0x8] sm:$0xff]  ;;  %v3561_v4 = vld [vmem:[%s3547_s17] sm:$0xff]  ;;  %v3583_v19 = vld [vmem:[%s3542_s9 + $0x18] sm:$0xff]  ;;  %s2902_s24 = sshll.u32 %s191_s20, 1  ;;  %s3884_s30 = scalar_lea.hbm %s3922_s3, %s2961_s25 }
  0x2c   : > { %v333_v5 = vsel %vm329_vm1, %v3558_v3, 0.0  ;;  %3069 = vmatprep.mubr.msk.f32.mxu1 %vm329_vm1, %v3561_v4  ;;  %3060 = vmatmul.mubr.msk.f32.vlgmr.msra.gmra.mxu0 %vm229_vm0, %v3553_v2  ;;  %v330_v6 = vsel %vm329_vm1, %v3561_v4, 0.0  ;;  %s193_s26 = scalar_lea.vmem [#allocation5], %s2902_s24  ;;  %s2800_s4 = scalar_lea.sflag [#allocation4], %s191_s20 }
  0x2d   : > { %334 = vadd.xlane.f32.xlu0 %v333_v5  ;;  %3062 = vmatprep.mubr.msk.f32.mxu0 %vm229_vm0, %v3577_v18  ;;  %s2813_s27 = sshll.u32 %s193_s26, 4  ;;  %s3450_s16 = smov [#allocation5]   ;;  %s2814_s27 = int_to_ptr.vmem [resolvable:$true] %s2813_s27 }
  0x2e   : > { %3073 = vmatpush3.msra.mxu0 %v3573_v17  ;;  %s3378_s5 = scalar_lea.vmem %s2814_s27, 32  ;;  %s3382_s6 = sshll.u32 %s3450_s16, 4  ;;  %s3383_s6 = int_to_ptr.vmem [resolvable:$false] %s3382_s6 }
  0x2f   : > { %3074 = vmatprep.subr.mxu0 %v3585_v20  ;;  %p3379_p6 = scmp.ne.s32.totalorder %s2814_s27, %s3378_s5  ;;  %s3384_s7 = scalar_lea.vmem %s3383_s6, 64 }
  0x30   : > { %3063 = vmatmul.mubr.msk.f32.gmra.mxu0 %vm229_vm0, %v3583_v19  ;;  %p3385_p11 = scmp.lt.s32.totalorder %s2814_s27, %s3383_s6  ;;  %p3386_p12 = scmp.lt.s32.totalorder %s3384_s7, %s3378_s5 }
  0x31   : > { %331 = vadd.xlane.f32.xlu0 %v330_v6  ;;  %3075 = vmatpush3.msra.mxu0 %v3585_v20  ;;  %p3380_p9 = pnand %p3379_p6, %p3509_p5 }
  0x32   : > { %3076 = vmatprep.subr.mxu0 %v3591_v21  ;;  %p3387_p13 = por %p3386_p12, %p3385_p11 }
  0x33   : > { %3077 = vmatpush3.msra.mxu0 %v3591_v21  ;;  %p3381_p10 = pneg %p3380_p9 }
  0x34   : > { %3078 = vmatprep.subr.mxu0 %v3595_v22 }
  0x35   : > { %3079 = vmatpush3.msra.mxu0 %v3595_v22  ;;  %p3388_p0 = pnand %p3387_p13, %p3381_p10 }
  0x36   : > { %3083 = vmatprep.subr.mxu0 %v3447_v56 }
  0xb6   : > { %v335_v7 = vpop.xlane.xlu0 %334 }
  0xb7   : > { %v337_v9 = vadd.f32 1.0, %v335_v7 }
  0xb9   : > { %3312 = vrsqrt.f32 %v337_v9 }
  0xba   : > { %v332_v8 = vpop.xlane.xlu0 %331 }
  0xbb   : > { %v336_v10 = vadd.f32 1.0, %v332_v8 }
  0xbd   : > { %3314 = vrsqrt.f32 %v336_v10 }
  0xc6   : > { %v3313_v11 = vpop.eup %3312 }
  0xca   : > { %v3315_v12 = vpop.eup %3314 }
  0xec   : > { %v3061_v13 = vpop.f32.mrf.mxu0 }
  0xed   : > { %v341_v14 = vmul.f32 %v3313_v11, %v3061_v13 }
  0xee   : > { %v308_v15 = vpop.f32.mrf.mxu0 }
  0xef   : > { %v340_v16 = vmul.f32 %v3315_v12, %v308_v15  ;;  %3065 = vmatprep.subr.mxu1 %v341_v14  ;;  %v3669_v15 = vld [vmem:[#allocation2 + $0x58] sm:$0xff] }
  0xf0   : > { %3066 = vmatpush3.msra.mxu1 %v341_v14  ;;  %v3609_v37 = vpop.f32.mrf.mxu0 }
  0xf1   : > { %3067 = vmatprep.subr.mxu1 %v340_v16 }
  0xf2   : > { %3068 = vmatpush3.msra.mxu1 %v340_v16  ;;  %v3611_v38 = vpop.f32.mrf.mxu0 }
  0xf3   : > { %3070 = vmatmul.mubr.msk.f32.vlgmr.msra.gmra.mxu1 %vm329_vm1, %v3558_v3  ;;  %3090 = vmatprep.subr.mxu1 %v3447_v56 }
  0xf4   : > { %3091 = vmatpush3.msra.mxu1 %v3558_v3  ;;  %3094 = vmatprep.mubr.msk.f32.mxu1 %vm3448_vm4, %v3447_v56 }
  0xf5   : > { %3092 = vmatprep.subr.mxu1 %v3447_v56 }
  0xf6   : > { %3093 = vmatpush3.msra.mxu1 %v3561_v4 }
  0xf7   : > { %3104 = vmatprep.subr.mxu1 %v3447_v56 }
 0x1b3   : > { %v3071_v23 = vpop.f32.mrf.mxu1 }
 0x1b4   : > { %v420_v24 = vadd.f32 %v3071_v23, %v341_v14  ;;  %v3665_v14 = vld [vmem:[#allocation2 + $0x60] sm:$0xff]  ;;  %v3677_v23 = vld [vmem:[#allocation2 + $0x48] sm:$0xff] }
 0x1b5   : > { %v414_v26 = vpop.f32.mrf.mxu1 }
 0x1b6   : > { %v424_v27 = vmul.f32 %v3313_v11, %v420_v24  ;;  %v415_v28 = vadd.f32 %v414_v26, %v340_v16  ;;  %v3673_v16 = vld [vmem:[#allocation2 + $0x50] sm:$0xff] }
 0x1b8   : > { %v430_v29 = vadd.f32 %v3599_v25, %v424_v27  ;;  %v423_v30 = vmul.f32 %v3315_v12, %v415_v28 }
 0x1ba   : > { %v432_v31 = vmax.f32 %v430_v29, 0.0  ;;  %v429_v32 = vadd.f32 %v3599_v25, %v423_v30  ;;  %v3683_v29 = vld [vmem:[#allocation2 + $0x40] ss:$0 sm:$0xff] }
 0x1bc   : > { %v431_v33 = vmax.f32 %v429_v32, 0.0  ;;  %v1464_v34 = vsel %vm437_vm2, %v432_v31, 0.0 }
 0x1be   : > { %v1463_v35 = vsel %vm437_vm2, %v431_v33, 0.0  ;;  %3080 = vmatprep.mubr.msk.f32.mxu0 %vm437_vm2, %v431_v33 }
 0x1bf   : > { %v3606_v36 = vadd.f32 %v1464_v34, %v1463_v35  ;;  %3081 = vmatmul.mubr.msk.f32.vlgmr.msra.gmra.mxu0 %vm437_vm2, %v432_v31 }
 0x1c0   : > { %3084 = vmatpush3.msra.mxu0 %v3553_v2  ;;  %3087 = vmatprep.mubr.msk.f32.mxu0 %vm3448_vm4, %v3447_v56 }
 0x1c1   : > { %3085 = vmatprep.subr.mxu0 %v3447_v56  ;;  %v1466_v24 = vrot.slane %v3606_v36, 4 }
 0x1c2   : > { %3086 = vmatpush3.msra.mxu0 %v3550_v1 }
 0x1c3   : > { %3097 = vmatprep.subr.mxu0 %v3447_v56  ;;  %v1467_v28 = vadd.f32 %v1466_v24, %v3606_v36 }
 0x1c5   : > { %v1468_v33 = vrot.slane %v1467_v28, 2 }
 0x27f   : > { %v3082_v39 = vpop.f32.mrf.mxu0 }
 0x280   : > { %v516_v43 = vadd.f32 %v3082_v39, %v3613_v40  ;;  %v1469_v39 = vadd.f32 %v1468_v33, %v1467_v28 }
 0x281   : > { %v510_v41 = vpop.f32.mrf.mxu0 }
 0x282   : > { %v511_v42 = vadd.f32 %v3613_v40, %v510_v41  ;;  %v523_v45 = vsel %vm519_vm3, %v516_v43, -inf  ;;  %v1470_v36 = vrot.slane %v1469_v39, 1 }
 0x284   : > { %v520_v44 = vsel %vm519_vm3, %v511_v42, -inf }
 0x285   : > { %521 = vmax.xlane.f32.xlu1 %v520_v44 }
 0x289   : > { %524 = vmax.xlane.f32.xlu1 %v523_v45  ;;  %v1471_v45 = vadd.f32 %v1470_v36, %v1469_v39 }
 0x30e   : > { %v522_v46 = vpop.xlane.xlu1 %521 }
 0x30f   : > { %v526_v47 = vsub.f32 %v511_v42, %v522_v46 }
 0x311   : > { %v528_v48 = vmul.f32 1.442695, %v526_v47 }
 0x312   : > { %v525_v49 = vpop.xlane.xlu1 %524 }
 0x313   : > { %3316 = vpow2.f32 %v528_v48  ;;  %v527_v50 = vsub.f32 %v516_v43, %v525_v49  ;;  %v1473_v48 = vmul.f32 0.0625, %v1471_v45 }
 0x315   : > { %v530_v51 = vmul.f32 1.442695, %v527_v50 }
 0x317   : > { %3318 = vpow2.f32 %v530_v51  ;;  %v3692_v51 = vld [vmem:[#allocation2 + $0x68] ss:$0 sm:$0xff] }
 0x320   : > { %v3317_v52 = vpop.eup %3316 }
 0x321   : > { %v532_v53 = vsel %vm519_vm3, %v3317_v52, 0.0 }
 0x322   : > { %533 = vadd.xlane.f32.xlu0 %v532_v53 }
 0x324   : > { %v3319_v54 = vpop.eup %3318 }
 0x325   : > { %v535_v55 = vsel %vm519_vm3, %v3319_v54, 0.0 }
 0x326   : > { %536 = vadd.xlane.f32.xlu1 %v535_v55 }
 0x3ab   : > { %v534_v57 = vpop.xlane.xlu0 %533 }
 0x3ac   : > { %3320 = vrcp.f32 %v534_v57 }
 0x3af   : > { %v537_v58 = vpop.xlane.xlu1 %536 }
 0x3b0   : > { %3322 = vrcp.f32 %v537_v58 }
 0x3b9   : > { %v3321_v59 = vpop.eup %3320 }
 0x3ba   : > { %v540_v60 = vmul.f32 %v3321_v59, %v3317_v52 }
 0x3bc   : > { %542 = vxpose.xlu0.b32.start [1/2] (short) (narrow) %v540_v60, 8 }
 0x3bd   : > { %v3323_v61 = vpop.eup %3322 }
 0x3be   : > { %v541_v62 = vmul.f32 %v3323_v61, %v3319_v54 }
 0x3c0   : > { %543 = vxpose.xlu0.b32.end [2/2] (short) (narrow) %v541_v62, 8 }
 0x438   : > { %v558_v63 = vpop.trf.xlu0 }
 0x439   : > { %3088 = vmatmul.mubr.msk.f32.vlgmr.msra.gmra.mxu0 %vm329_vm1, %v558_v63  ;;  %3095 = vmatmul.mubr.msk.f32.vlgmr.msra.gmra.mxu1 %vm329_vm1, %v558_v63 }
 0x43a   : > { %3098 = vmatpush3.msra.mxu0 %v541_v62  ;;  %3101 = vmatprep.mubr.msk.f32.mxu0 %vm3448_vm4, %v3447_v56 }
 0x43b   : > { %3099 = vmatprep.subr.mxu0 %v3447_v56  ;;  %3106 = vmatprep.mubr.msk.f32.mxu1 %vm3448_vm4, %v3447_v56 }
 0x43c   : > { %3100 = vmatpush3.msra.mxu0 %v540_v60  ;;  %3105 = vmatpush3.msra.mxu1 %v3643_v0 }
 0x43d   : > { %3109 = vmatprep.subr.mxu0 %v3447_v56  ;;  %3114 = vmatprep.subr.mxu1 %v3447_v56 }
 0x4f9   : > { %v643_v1 = vpop.f32.mrf.mxu0  ;;  %v713_v2 = vpop.f32.mrf.mxu1 }
 0x4fa   : > { %3102 = vmatmul.mubr.msk.f32.vlgmr.msra.gmra.mxu0 %vm329_vm1, %v713_v2  ;;  %3107 = vmatmul.mubr.msk.f32.vlgmr.msra.gmra.mxu1 %vm229_vm0, %v643_v1  ;;  %v3700_v2 = vld [vmem:[%s3547_s17 + $0x18] sm:$0xff] }
 0x4fb   : > { %v3089_v3 = vpop.f32.mrf.mxu0  ;;  %v3096_v4 = vpop.f32.mrf.mxu1  ;;  %3111 = vmatprep.mubr.msk.f32.mxu0 %vm3448_vm4, %v3447_v56  ;;  %3122 = vmatprep.mubr.msk.f32.mxu1 %vm3448_vm4, %v3447_v56 }
 0x4fc   : > { %3115 = vmatpush3.msra.mxu1 %v3665_v14  ;;  %v1583_v3 = vsel %vm329_vm1, %v3700_v2, 0.0 }
 0x4fd   : > { %3116 = vmatprep.subr.mxu1 %v3447_v56 }
 0x4fe   : > { %3117 = vmatpush3.msra.mxu1 %v3669_v15 }
 0x4ff   : > { %3118 = vmatprep.subr.mxu1 %v3447_v56 }
 0x500   : > { %3119 = vmatpush3.msra.mxu1 %v3673_v16 }
 0x501   : > { %3120 = vmatprep.subr.mxu1 %v3447_v56 }
 0x502   : > { %3121 = vmatpush3.msra.mxu1 %v3677_v23 }
 0x503   : > { %3135 = vmatprep.subr.mxu1 %v3447_v56 }
 0x5ba   : > { %v3653_v5 = vpop.f32.mrf.mxu0  ;;  %v859_v6 = vpop.f32.mrf.mxu1 }
 0x5bb   : > { %v864_v7 = vsel %vm863_vm5, %v3653_v5, 0.0 }
 0x5bc   : > { %v3108_v8 = vpop.f32.mrf.mxu1  ;;  %865 = vadd.xlane.f32.xlu1 %v864_v7  ;;  %v3103_v9 = vpop.f32.mrf.mxu0 }
 0x645   : > { %v866_v10 = vpop.xlane.xlu1 %865 }
 0x646   : > { %v867_v11 = vadd.f32 1.0, %v866_v10 }
 0x648   : > { %3324 = vrsqrt.f32 %v867_v11 }
 0x655   : > { %v3325_v12 = vpop.eup %3324 }
 0x656   : > { %v869_v13 = vmul.f32 %v3325_v12, %v859_v6  ;;  %v3713_v6 = vld [vmem:[#allocation2 + $0x70] sm:$0xff] }
 0x658   : > { %3110 = vmatpush3.msk.msra.mxu0 %vm873_vm6, %v869_v13 }
 0x659   : > { %3112 = vmatmul.mubr.msk.f32.vlgmr.msra.gmra.mxu0 %vm519_vm3, %v3653_v5  ;;  %3125 = vmatprep.subr.mxu0 %v3447_v56 }
 0x65a   : > { %3126 = vmatpush3.msk.msra.mxu0 %vm873_vm6, %v643_v1  ;;  %3127 = vmatprep.mubr.msk.f32.mxu0 %vm3448_vm4, %v3447_v56 }
 0x65b   : > { %3130 = vmatprep.subr.mxu0 %v3447_v56 }
 0x719   : > { %v943_v26 = vpop.f32.mrf.mxu0 }
 0x71a   : > { %v944_v27 = vadd.f32 %v943_v26, %v869_v13  ;;  %v3724_v13 = vld [vmem:[%s3547_s17 + $0x10] sm:$0xff] }
 0x71b   : > { %v3113_v30 = vpop.f32.mrf.mxu0 }
 0x71c   : > { %v947_v31 = vmul.f32 %v3325_v12, %v944_v27  ;;  %v1580_v27 = vsel %vm329_vm1, %v3724_v13, 0.0 }
 0x71e   : > { %v952_v32 = vadd.f32 %v3683_v29, %v947_v31 }
 0x720   : > { %v953_v34 = vmax.f32 %v952_v32, 0.0 }
 0x722   : > { %v1475_v35 = vsel %vm1474_vm7, %v953_v34, 0.0  ;;  %3123 = vmatmul.mubr.msk.f32.vlgmr.msra.gmra.mxu1 %vm437_vm2, %v953_v34 }
 0x723   : > { %v1476_v41 = vrot.slane %v1475_v35, 4  ;;  %3137 = vmatprep.mubr.msk.f32.mxu1 %vm3448_vm4, %v3447_v56 }
 0x725   : > { %v1477_v42 = vadd.f32 %v1476_v41, %v1475_v35 }
 0x727   : > { %v1478_v43 = vrot.slane %v1477_v42, 2 }
 0x729   : > { %v1479_v44 = vadd.f32 %v1478_v43, %v1477_v42 }
 0x72b   : > { %v1480_v46 = vrot.slane %v1479_v44, 1 }
 0x72d   : > { %v1481_v47 = vadd.f32 %v1480_v46, %v1479_v44  ;;  %v3762_v44 = vld [vmem:[#allocation2 + $0x78] ss:$0 sm:$0xff] }
 0x72f   : > { %v1483_v49 = vmul.f32 0.25, %v1481_v47 }
 0x731   : > { %v3690_v50 = vadd.f32 %v1483_v49, %v1473_v48 }
 0x7e2   : > { %v1027_v52 = vpop.f32.mrf.mxu1 }
 0x7e3   : > { %v1028_v53 = vadd.f32 %v3692_v51, %v1027_v52 }
 0x7e4   : > { %v3124_v54 = vpop.f32.mrf.mxu1 }
 0x7e5   : > { %v1032_v55 = vsel %vm1031_vm8, %v1028_v53, -inf }
 0x7e6   : > { %1033 = vmax.xlane.f32.xlu1 %v1032_v55 }
 0x86f   : > { %v1034_v57 = vpop.xlane.xlu1 %1033 }
 0x870   : > { %v1035_v58 = vsub.f32 %v1028_v53, %v1034_v57 }
 0x872   : > { %v1036_v59 = vmul.f32 1.442695, %v1035_v58 }
 0x874   : > { %3326 = vpow2.f32 %v1036_v59 }
 0x881   : > { %v3327_v60 = vpop.eup %3326 }
 0x882   : > { %v1038_v61 = vsel %vm1031_vm8, %v3327_v60, 0.0 }
 0x883   : > { %1039 = vadd.xlane.f32.xlu1 %v1038_v61 }
 0x90c   : > { %v1040_v62 = vpop.xlane.xlu1 %1039 }
 0x90d   : > { %3328 = vrcp.f32 %v1040_v62 }
 0x91a   : > { %v3329_v63 = vpop.eup %3328 }
 0x91b   : > { %v1042_v1 = vmul.f32 %v3329_v63, %v3327_v60 }
 0x91d   : > { %1043 = vxpose.xlu1.b32.start.end [1/1] (short) (narrow) %v1042_v1, 8  ;;  %3136 = vmatpush3.msk.msra.mxu1 %vm873_vm6, %v1042_v1 }
 0x91e   : > { %3145 = vmatprep.subr.mxu1 %v3447_v56 }
 0x944   : > { %1584 = vadd.xlane.f32.xlu1 %v1583_v3 }
 0x999   : > { %v1059_v4 = vpop.trf.xlu1 }
 0x99a   : > { %3128 = vmatmul.mubr.msk.f32.vlgmr.msra.gmra.mxu0 %vm519_vm3, %v1059_v4 }
 0x99b   : > { %3131 = vmatpush3.msk.msra.mxu0 %vm873_vm6, %v3653_v5  ;;  %3132 = vmatprep.mubr.msk.f32.mxu0 %vm3448_vm4, %v3447_v56 }
 0x99c   : > { %3140 = vmatprep.subr.mxu0 %v3447_v56 }
 0x99e   : > { %3133 = vmatmul.mubr.msk.f32.vlgmr.msra.gmra.mxu0 %vm519_vm3, %v1059_v4 }
 0x99f   : > { %3142 = vmatprep.mubr.msk.f32.mxu0 %vm3448_vm4, %v3447_v56  ;;  %3141 = vmatpush3.msra.mxu0 %v3713_v6 }
 0x9a0   : > { %3150 = vmatprep.subr.mxu0 %v3447_v56 }
 0x9cd   : > { %v1585_v28 = vpop.xlane.xlu1 %1584 }
 0x9ce   : > { %v1587_v30 = vadd.f32 1.0, %v1585_v28 }
 0x9d0   : > { %3330 = vrsqrt.f32 %v1587_v30 }
 0x9dd   : > { %v3331_v35 = vpop.eup %3330 }
 0x9de   : > { %v1591_v42 = vmul.f32 %v3331_v35, %v3609_v37  ;;  %v3746_v37 = vld [vmem:[#allocation2 + $0x98] sm:$0xff] }
 0xa5a   : > { %v1146_v7 = vpop.f32.mrf.mxu0 }
 0xa5b   : > { %3143 = vmatmul.mubr.msk.f32.vlgmr.msra.gmra.mxu0 %vm229_vm0, %v1146_v7 }
 0xa5c   : > { %v3129_v5 = vpop.f32.mrf.mxu0  ;;  %3158 = vmatprep.mubr.msk.f32.mxu0 %vm3448_vm4, %v3447_v56  ;;  %3151 = vmatpush3.msra.mxu0 %v3746_v37 }
 0xa5d   : > { %3152 = vmatprep.subr.mxu0 %v3447_v56 }
 0xa5e   : > { %v1218_v8 = vpop.f32.mrf.mxu0 }
 0xa5f   : > { %3138 = vmatmul.mubr.msk.f32.vlgmr.msra.gmra.mxu1 %vm519_vm3, %v1218_v8 }
 0xa60   : > { %v3134_v9 = vpop.f32.mrf.mxu0  ;;  %3147 = vmatprep.mubr.msk.f32.mxu1 %vm3448_vm4, %v3447_v56 }
 0xb1b   : > { %v1367_v10 = vpop.f32.mrf.mxu0 }
 0xb1d   : > { %v3144_v11 = vpop.f32.mrf.mxu0 }
 0xb1f   : > { %v1294_v12 = vpop.f32.mrf.mxu1 }
 0xb20   : > { %v1372_v24 = vsel %vm1371_vm9, %v1294_v12, 0.0 }
 0xb21   : > { %1373 = vadd.xlane.f32.xlu0 %v1372_v24  ;;  %v3139_v26 = vpop.f32.mrf.mxu1 }
 0xb25   : > { %1581 = vadd.xlane.f32.xlu0 %v1580_v27 }
 0xbaa   : > { %v1374_v31 = vpop.xlane.xlu0 %1373 }
 0xbab   : > { %v1375_v32 = vadd.f32 1.0, %v1374_v31 }
 0xbad   : > { %3332 = vrsqrt.f32 %v1375_v32 }
 0xbae   : > { %v1582_v33 = vpop.xlane.xlu0 %1581 }
 0xbaf   : > { %v1586_v34 = vadd.f32 1.0, %v1582_v33 }
 0xbb1   : > { %3334 = vrsqrt.f32 %v1586_v34 }
 0xbba   : > { %v3333_v39 = vpop.eup %3332 }
 0xbbb   : > { %v1377_v41 = vmul.f32 %v3333_v39, %v1367_v10 }
 0xbbd   : > { %3146 = vmatpush3.msk.msra.mxu1 %vm1382_vm10, %v1377_v41 }
 0xbbe   : > { %v3335_v36 = vpop.eup %3334  ;;  %3148 = vmatmul.mubr.msk.f32.vlgmr.msra.gmra.mxu1 %vm1378_vm11, %v1294_v12  ;;  %3161 = vmatprep.subr.mxu1 %v1591_v42 }
 0xbbf   : > { %3162 = vmatpush3.msra.mxu1 %v1591_v42  ;;  %v1590_v43 = vmul.f32 %v3335_v36, %v3611_v38  ;;  %3165 = vmatprep.mubr.msk.f32.mxu1 %vm329_vm1, %v3724_v13 }
 0xbc1   : > { %3163 = vmatprep.subr.mxu1 %v1590_v43 }
 0xbc2   : > { %3164 = vmatpush3.msra.mxu1 %v1590_v43 }
 0xbc3   : > { %3166 = vmatmul.mubr.msk.f32.vlgmr.msra.gmra.mxu1 %vm329_vm1, %v3700_v2  ;;  %3168 = vmatprep.subr.mxu1 %v3573_v17 }
 0xbc4   : > { %3169 = vmatpush3.msra.mxu1 %v3573_v17  ;;  %v3750_v17 = vld [vmem:[#allocation2 + $0x90] sm:$0xff] }
 0xbc5   : > { %3170 = vmatprep.subr.mxu1 %v3585_v20  ;;  %3153 = vmatpush3.msra.mxu0 %v3750_v17 }
 0xbc6   : > { %3171 = vmatpush3.msra.mxu1 %v3585_v20  ;;  %3154 = vmatprep.subr.mxu0 %v3447_v56  ;;  %v3754_v20 = vld [vmem:[#allocation2 + $0x88] sm:$0xff] }
 0xbc7   : > { %3172 = vmatprep.subr.mxu1 %v3591_v21  ;;  %3155 = vmatpush3.msra.mxu0 %v3754_v20 }
 0xbc8   : > { %3173 = vmatpush3.msra.mxu1 %v3591_v21  ;;  %3156 = vmatprep.subr.mxu0 %v3447_v56  ;;  %v3758_v21 = vld [vmem:[#allocation2 + $0x80] sm:$0xff] }
 0xbc9   : > { %3174 = vmatprep.subr.mxu1 %v3595_v22  ;;  %3157 = vmatpush3.msra.mxu0 %v3758_v21 }
 0xbca   : > { %3175 = vmatpush3.msra.mxu1 %v3595_v22  ;;  %3179 = vmatprep.subr.mxu0 %v3447_v56 }
 0xbcb   : > { %3193 = vmatprep.subr.mxu1 %v3447_v56 }
 0xc7e   : > { %v1452_v22 = vpop.f32.mrf.mxu1 }
 0xc7f   : > { %v1453_v38 = vadd.f32 %v1452_v22, %v1377_v41 }
 0xc80   : > { %v3149_v45 = vpop.f32.mrf.mxu1 }
 0xc81   : > { %v1456_v46 = vmul.f32 %v3333_v39, %v1453_v38 }
 0xc83   : > { %v1461_v47 = vadd.f32 %v3762_v44, %v1456_v46  ;;  %v3167_v48 = vpop.f32.mrf.mxu1 }
 0xc84   : > { %v1670_v49 = vadd.f32 %v3167_v48, %v1591_v42 }
 0xc85   : > { %v1462_v52 = vmax.f32 %v1461_v47, 0.0  ;;  %v1664_v53 = vpop.f32.mrf.mxu1 }
 0xc86   : > { %v1674_v54 = vmul.f32 %v3331_v35, %v1670_v49  ;;  %v1665_v55 = vadd.f32 %v1664_v53, %v1590_v43 }
 0xc87   : > { %v1486_v57 = vsel %vm1485_vm12, %v1462_v52, 0.0 }
 0xc88   : > { %v1487_v58 = vrot.slane %v1486_v57, 4  ;;  %v1676_v59 = vadd.f32 %v3599_v25, %v1674_v54  ;;  %v1673_v60 = vmul.f32 %v3335_v36, %v1665_v55 }
 0xc8a   : > { %v1488_v61 = vadd.f32 %v1487_v58, %v1486_v57  ;;  %v1678_v62 = vmax.f32 %v1676_v59, 0.0  ;;  %v1675_v63 = vadd.f32 %v3599_v25, %v1673_v60 }
 0xc8c   : > { %v1489_v1 = vrot.slane %v1488_v61, 2  ;;  %v1677_v3 = vmax.f32 %v1675_v63, 0.0  ;;  %v2686_v7 = vsel %vm437_vm2, %v1678_v62, 0.0 }
 0xc8e   : > { %v1490_v4 = vadd.f32 %v1489_v1, %v1488_v61  ;;  %v2685_v5 = vsel %vm437_vm2, %v1677_v3, 0.0  ;;  %3176 = vmatprep.mubr.msk.f32.mxu1 %vm437_vm2, %v1677_v3 }
 0xc8f   : > { %v3771_v8 = vadd.f32 %v2686_v7, %v2685_v5  ;;  %3177 = vmatmul.mubr.msk.f32.vlgmr.msra.gmra.mxu1 %vm437_vm2, %v1678_v62 }
 0xc90   : > { %v1491_v9 = vrot.slane %v1490_v4, 1  ;;  %3197 = vmatprep.mubr.msk.f32.mxu1 %vm3448_vm4, %v3447_v56 }
 0xc92   : > { %v1492_v10 = vadd.f32 %v1491_v9, %v1490_v4 }
 0xc94   : > { %v1494_v11 = vmul.f32 0.5, %v1492_v10 }
 0xc96   : > { %v1495_v25 = vadd.f32 %v1494_v11, %v3690_v50 }
 0xc98   : > { %v3777_v12 = vmul.f32 0.33333334, %v1495_v25 }
 0xc9a   : > { %3159 = vmatmul.mubr.msk.f32.vlgmr.msra.gmra.mxu0 %vm437_vm2, %v3777_v12 }
 0xc9b   : > { %3180 = vmatpush3.msra.mxu0 %v3583_v19  ;;  %3183 = vmatprep.mubr.msk.f32.mxu0 %vm3448_vm4, %v3447_v56 }
 0xc9c   : > { %3181 = vmatprep.subr.mxu0 %v3447_v56 }
 0xc9d   : > { %3182 = vmatpush3.msra.mxu0 %v3577_v18 }
 0xc9e   : > { %3186 = vmatprep.subr.mxu0 %v3447_v56 }
 0xd4f   : > { %v3178_v24 = vpop.f32.mrf.mxu1 }
 0xd50   : > { %v1757_v27 = vadd.f32 %v3178_v24, %v3613_v40 }
 0xd51   : > { %v1751_v26 = vpop.f32.mrf.mxu1 }
 0xd52   : > { %v1752_v50 = vadd.f32 %v3613_v40, %v1751_v26  ;;  %v1763_v19 = vsel %vm519_vm3, %v1757_v27, -inf }
 0xd54   : > { %v1760_v28 = vsel %vm519_vm3, %v1752_v50, -inf }
 0xd55   : > { %1761 = vmax.xlane.f32.xlu0 %v1760_v28 }
 0xd59   : > { %1764 = vmax.xlane.f32.xlu0 %v1763_v19 }
 0xd5a   : > { %v3791_v30 = vpop.f32.mrf.mxu0 }
 0xd5c   : > { %v3160_v31 = vpop.f32.mrf.mxu0 }
 0xdde   : > { %v1762_v32 = vpop.xlane.xlu0 %1761 }
 0xddf   : > { %v1766_v33 = vsub.f32 %v1752_v50, %v1762_v32 }
 0xde1   : > { %v1768_v18 = vmul.f32 1.442695, %v1766_v33 }
 0xde2   : > { %v1765_v34 = vpop.xlane.xlu0 %1764 }
 0xde3   : > { %3336 = vpow2.f32 %v1768_v18  ;;  %v1767_v35 = vsub.f32 %v1757_v27, %v1765_v34 }
 0xde5   : > { %v1770_v39 = vmul.f32 1.442695, %v1767_v35 }
 0xde7   : > { %3338 = vpow2.f32 %v1770_v39 }
 0xdf0   : > { %v3337_v41 = vpop.eup %3336 }
 0xdf1   : > { %v1772_v40 = vsel %vm519_vm3, %v3337_v41, 0.0 }
 0xdf2   : > { %1773 = vadd.xlane.f32.xlu1 %v1772_v40 }
 0xdf4   : > { %v3339_v42 = vpop.eup %3338 }
 0xdf5   : > { %v1775_v36 = vsel %vm519_vm3, %v3339_v42, 0.0 }
 0xdf6   : > { %1776 = vadd.xlane.f32.xlu0 %v1775_v36 }
 0xe7b   : > { %v1774_v43 = vpop.xlane.xlu1 %1773 }
 0xe7c   : > { %3340 = vrcp.f32 %v1774_v43 }
 0xe7f   : > { %v1777_v22 = vpop.xlane.xlu0 %1776 }
 0xe80   : > { %3342 = vrcp.f32 %v1777_v22 }
 0xe89   : > { %v3341_v38 = vpop.eup %3340 }
 0xe8a   : > { %v1780_v45 = vmul.f32 %v3341_v38, %v3337_v41 }
 0xe8c   : > { %1782 = vxpose.xlu1.b32.start [1/2] (short) (narrow) %v1780_v45, 8 }
 0xe8d   : > { %v3343_v46 = vpop.eup %3342 }
 0xe8e   : > { %v1781_v47 = vmul.f32 %v3343_v46, %v3339_v42 }
 0xe90   : > { %1783 = vxpose.xlu1.b32.end [2/2] (short) (narrow) %v1781_v47, 8  ;;  %3194 = vmatpush3.msra.mxu1 %v1781_v47 }
 0xe91   : > { %3195 = vmatprep.subr.mxu1 %v3447_v56 }
 0xe92   : > { %3196 = vmatpush3.msra.mxu1 %v1780_v45 }
 0xe93   : > { %3205 = vmatprep.subr.mxu1 %v3447_v56 }
 0xf08   : > { %v1798_v48 = vpop.trf.xlu1 }
 0xf09   : > { %3184 = vmatmul.mubr.msk.f32.vlgmr.msra.gmra.mxu0 %vm329_vm1, %v1798_v48 }
 0xf0a   : > { %3187 = vmatpush3.msra.mxu0 %v3700_v2  ;;  %3190 = vmatprep.mubr.msk.f32.mxu0 %vm3448_vm4, %v3447_v56 }
 0xf0b   : > { %3188 = vmatprep.subr.mxu0 %v3447_v56 }
 0xf0c   : > { %3189 = vmatpush3.msra.mxu0 %v3724_v13 }
 0xf0d   : > { %3191 = vmatmul.mubr.msk.f32.vlgmr.msra.gmra.mxu0 %vm329_vm1, %v1798_v48  ;;  %3200 = vmatprep.subr.mxu0 %v3447_v56  ;;  %v224_v48 = vld [vmem:[#allocation2 + $0xa0] sm:$0x1] }
 0xf0e   : > { %3201 = vmatpush3.msra.mxu0 %v3643_v0  ;;  %3202 = vmatprep.mubr.msk.f32.mxu0 %vm3448_vm4, %v3447_v56 }
 0xf0f   : > { %3210 = vmatprep.subr.mxu0 %v3447_v56 }
 0xfc9   : > { %v1883_v49 = vpop.f32.mrf.mxu0 }
 0xfca   : > { %3203 = vmatmul.mubr.msk.f32.vlgmr.msra.gmra.mxu0 %vm229_vm0, %v1883_v49 }
 0xfcb   : > { %v3185_v2 = vpop.f32.mrf.mxu0  ;;  %3211 = vmatpush3.msra.mxu0 %v3665_v14  ;;  %3218 = vmatprep.mubr.msk.f32.mxu0 %vm3448_vm4, %v3447_v56 }
 0xfcc   : > { %3212 = vmatprep.subr.mxu0 %v3447_v56 }
 0xfcd   : > { %v1953_v13 = vpop.f32.mrf.mxu0  ;;  %3213 = vmatpush3.msra.mxu0 %v3669_v15 }
 0xfce   : > { %3198 = vmatmul.mubr.msk.f32.vlgmr.msra.gmra.mxu1 %vm329_vm1, %v1953_v13  ;;  %3214 = vmatprep.subr.mxu0 %v3447_v56 }
 0xfcf   : > { %v3192_v0 = vpop.f32.mrf.mxu0  ;;  %3207 = vmatprep.mubr.msk.f32.mxu1 %vm3448_vm4, %v3447_v56  ;;  %3215 = vmatpush3.msra.mxu0 %v3673_v16  ;;  %v2688_v16 = vrot.slane %v3771_v8, 4 }
 0xfd0   : > { %3216 = vmatprep.subr.mxu0 %v3447_v56 }
 0xfd1   : > { %3217 = vmatpush3.msra.mxu0 %v3677_v23  ;;  %v2689_v61 = vadd.f32 %v2688_v16, %v3771_v8 }
 0xfd2   : > { %3231 = vmatprep.subr.mxu0 %v3447_v56 }
 0xfd3   : > { %v2690_v3 = vrot.slane %v2689_v61, 2 }
 0xfd5   : > { %v2691_v5 = vadd.f32 %v2690_v3, %v2689_v61 }
 0xfd7   : > { %v2692_v11 = vrot.slane %v2691_v5, 1 }
 0xfd9   : > { %v2693_v8 = vadd.f32 %v2692_v11, %v2691_v5 }
 0xfdb   : > { %v2694_v27 = vmul.f32 0.0625, %v2693_v8 }
0x108a   : > { %v2099_v14 = vpop.f32.mrf.mxu0 }
0x108c   : > { %v3204_v52 = vpop.f32.mrf.mxu0 }
0x108e   : > { %v2026_v53 = vpop.f32.mrf.mxu1 }
0x108f   : > { %v2103_v15 = vsel %vm863_vm5, %v2026_v53, 0.0 }
0x1090   : > { %2104 = vadd.xlane.f32.xlu0 %v2103_v15  ;;  %v3199_v54 = vpop.f32.mrf.mxu1 }
0x1119   : > { %v2105_v55 = vpop.xlane.xlu0 %2104 }
0x111a   : > { %v2106_v57 = vadd.f32 1.0, %v2105_v55 }
0x111c   : > { %3344 = vrsqrt.f32 %v2106_v57 }
0x1129   : > { %v3345_v58 = vpop.eup %3344 }
0x112a   : > { %v2108_v59 = vmul.f32 %v3345_v58, %v2099_v14 }
0x112c   : > { %3206 = vmatpush3.msk.msra.mxu1 %vm873_vm6, %v2108_v59 }
0x112d   : > { %3208 = vmatmul.mubr.msk.f32.vlgmr.msra.gmra.mxu1 %vm519_vm3, %v2026_v53  ;;  %3221 = vmatprep.subr.mxu1 %v3447_v56 }
0x112e   : > { %3222 = vmatpush3.msk.msra.mxu1 %vm873_vm6, %v1883_v49  ;;  %3223 = vmatprep.mubr.msk.f32.mxu1 %vm3448_vm4, %v3447_v56  ;;  %v1567_v49 = vadd.f32 %v3791_v30, %v224_v48 }
0x112f   : > { %3226 = vmatprep.subr.mxu1 %v3447_v56 }
0x11ed   : > { %v2181_v23 = vpop.f32.mrf.mxu1 }
0x11ee   : > { %v2182_v60 = vadd.f32 %v2181_v23, %v2108_v59 }
0x11ef   : > { %v3209_v62 = vpop.f32.mrf.mxu1 }
0x11f0   : > { %v2185_v63 = vmul.f32 %v3345_v58, %v2182_v60 }
0x11f2   : > { %v2186_v1 = vadd.f32 %v3683_v29, %v2185_v63 }
0x11f4   : > { %v2187_v4 = vmax.f32 %v2186_v1, 0.0 }
0x11f6   : > { %v2695_v7 = vsel %vm1474_vm7, %v2187_v4, 0.0  ;;  %3219 = vmatmul.mubr.msk.f32.vlgmr.msra.gmra.mxu0 %vm437_vm2, %v2187_v4 }
0x11f7   : > { %v2696_v9 = vrot.slane %v2695_v7, 4  ;;  %3233 = vmatprep.mubr.msk.f32.mxu0 %vm3448_vm4, %v3447_v56 }
0x11f9   : > { %v2697_v10 = vadd.f32 %v2696_v9, %v2695_v7 }
0x11fb   : > { %v2698_v25 = vrot.slane %v2697_v10, 2 }
0x11fd   : > { %v2699_v24 = vadd.f32 %v2698_v25, %v2697_v10 }
0x11ff   : > { %v2700_v26 = vrot.slane %v2699_v24, 1 }
0x1201   : > { %v2701_v50 = vadd.f32 %v2700_v26, %v2699_v24 }
0x1203   : > { %v2702_v29 = vmul.f32 0.25, %v2701_v50 }
0x1205   : > { %v3838_v28 = vadd.f32 %v2702_v29, %v2694_v27 }
0x12b6   : > { %v2257_v19 = vpop.f32.mrf.mxu0 }
0x12b7   : > { %v2258_v31 = vadd.f32 %v3692_v51, %v2257_v19 }
0x12b8   : > { %v3220_v32 = vpop.f32.mrf.mxu0 }
0x12b9   : > { %v2261_v33 = vsel %vm1031_vm8, %v2258_v31, -inf }
0x12ba   : > { %2262 = vmax.xlane.f32.xlu0 %v2261_v33 }
0x1343   : > { %v2263_v18 = vpop.xlane.xlu0 %2262 }
0x1344   : > { %v2264_v34 = vsub.f32 %v2258_v31, %v2263_v18 }
0x1346   : > { %v2265_v35 = vmul.f32 1.442695, %v2264_v34 }
0x1348   : > { %3346 = vpow2.f32 %v2265_v35 }
0x1355   : > { %v3347_v39 = vpop.eup %3346 }
0x1356   : > { %v2267_v41 = vsel %vm1031_vm8, %v3347_v39, 0.0 }
0x1357   : > { %2268 = vadd.xlane.f32.xlu0 %v2267_v41 }
0x13e0   : > { %v2269_v40 = vpop.xlane.xlu0 %2268 }
0x13e1   : > { %3348 = vrcp.f32 %v2269_v40 }
0x13ee   : > { %v3349_v42 = vpop.eup %3348 }
0x13ef   : > { %v2271_v36 = vmul.f32 %v3349_v42, %v3347_v39 }
0x13f1   : > { %2272 = vxpose.xlu0.b32.start.end [1/1] (short) (narrow) %v2271_v36, 8  ;;  %3232 = vmatpush3.msk.msra.mxu0 %vm873_vm6, %v2271_v36 }
0x13f2   : > { %3241 = vmatprep.subr.mxu0 %v3447_v56 }
0x146d   : > { %v2288_v51 = vpop.trf.xlu0 }
0x146e   : > { %3224 = vmatmul.mubr.msk.f32.vlgmr.msra.gmra.mxu1 %vm519_vm3, %v2288_v51 }
0x146f   : > { %3227 = vmatpush3.msk.msra.mxu1 %vm873_vm6, %v2026_v53  ;;  %3228 = vmatprep.mubr.msk.f32.mxu1 %vm3448_vm4, %v3447_v56 }
0x1470   : > { %3236 = vmatprep.subr.mxu1 %v3447_v56 }
0x1472   : > { %3229 = vmatmul.mubr.msk.f32.vlgmr.msra.gmra.mxu1 %vm519_vm3, %v2288_v51 }
0x1473   : > { %3237 = vmatpush3.msra.mxu1 %v3713_v6  ;;  %3238 = vmatprep.mubr.msk.f32.mxu1 %vm3448_vm4, %v3447_v56 }
0x1474   : > { %3246 = vmatprep.subr.mxu1 %v3447_v56 }
0x152e   : > { %v2375_v43 = vpop.f32.mrf.mxu1 }
0x152f   : > { %3239 = vmatmul.mubr.msk.f32.vlgmr.msra.gmra.mxu1 %vm229_vm0, %v2375_v43 }
0x1530   : > { %v3225_v22 = vpop.f32.mrf.mxu1  ;;  %3247 = vmatpush3.msra.mxu1 %v3746_v37  ;;  %3254 = vmatprep.mubr.msk.f32.mxu1 %vm3448_vm4, %v3447_v56 }
0x1531   : > { %3248 = vmatprep.subr.mxu1 %v3447_v56 }
0x1532   : > { %v2447_v38 = vpop.f32.mrf.mxu1  ;;  %3249 = vmatpush3.msra.mxu1 %v3750_v17 }
0x1533   : > { %3234 = vmatmul.mubr.msk.f32.vlgmr.msra.gmra.mxu0 %vm519_vm3, %v2447_v38  ;;  %3250 = vmatprep.subr.mxu1 %v3447_v56 }
0x1534   : > { %v3230_v6 = vpop.f32.mrf.mxu1  ;;  %3243 = vmatprep.mubr.msk.f32.mxu0 %vm3448_vm4, %v3447_v56  ;;  %3251 = vmatpush3.msra.mxu1 %v3754_v20 }
0x1535   : > { %3252 = vmatprep.subr.mxu1 %v3447_v56 }
0x1536   : > { %3253 = vmatpush3.msra.mxu1 %v3758_v21 }
0x15ef   : > { %v2596_v37 = vpop.f32.mrf.mxu1 }
0x15f1   : > { %v3240_v45 = vpop.f32.mrf.mxu1 }
0x15f3   : > { %v2523_v46 = vpop.f32.mrf.mxu0 }
0x15f4   : > { %v2600_v47 = vsel %vm1371_vm9, %v2523_v46, 0.0 }
0x15f5   : > { %2601 = vadd.xlane.f32.xlu1 %v2600_v47  ;;  %v3235_v17 = vpop.f32.mrf.mxu0 }
0x1606   : > { %1571 = vrot.lane.b32.xlu1 %v1567_v49, %s3449_s19 }
0x167e   : > { %v2602_v2 = vpop.xlane.xlu1 %2601 }
0x167f   : > { %v2603_v13 = vadd.f32 1.0, %v2602_v2 }
0x1681   : > { %3350 = vrsqrt.f32 %v2603_v13 }
0x1682   : > { %v1572_v1 = vpop.permute.xlu1 %1571 }
0x1683   : > { %v1574_v4 = vsel %vm437_vm2, %v3777_v12, %v1572_v1 }
0x1684   : > { %v1576_v10 = vsel %vm1575_vm13, %v1574_v4, 0.0 }
0x168e   : > { %v3351_v20 = vpop.eup %3350 }
0x168f   : > { %v2605_v0 = vmul.f32 %v3351_v20, %v2596_v37 }
0x1691   : > { %3242 = vmatpush3.msk.msra.mxu0 %vm1382_vm10, %v2605_v0 }
0x1692   : > { %3244 = vmatmul.mubr.msk.f32.vlgmr.msra.gmra.mxu0 %vm1378_vm11, %v2523_v46 }
0x1752   : > { %v2678_v56 = vpop.f32.mrf.mxu0 }
0x1753   : > { %v2679_v21 = vadd.f32 %v2678_v56, %v2605_v0 }
0x1754   : > { %v3245_v14 = vpop.f32.mrf.mxu0 }
0x1755   : > { %v2682_v52 = vmul.f32 %v3351_v20, %v2679_v21 }
0x1757   : > { %v2683_v53 = vadd.f32 %v3762_v44, %v2682_v52 }
0x1759   : > { %v2684_v15 = vmax.f32 %v2683_v53, 0.0 }
0x175b   : > { %v2704_v30 = vsel %vm1485_vm12, %v2684_v15, 0.0 }
0x175c   : > { %v2705_v54 = vrot.slane %v2704_v30, 4 }
0x175e   : > { %v2706_v55 = vadd.f32 %v2705_v54, %v2704_v30 }
0x1760   : > { %v2707_v57 = vrot.slane %v2706_v55, 2 }
0x1762   : > { %v2708_v58 = vadd.f32 %v2707_v57, %v2706_v55 }
0x1764   : > { %v2709_v59 = vrot.slane %v2708_v58, 1 }
0x1766   : > { %v2710_v16 = vadd.f32 %v2709_v59, %v2708_v58 }
0x1768   : > { %v2711_v23 = vmul.f32 0.5, %v2710_v16 }
0x176a   : > { %v2712_v60 = vadd.f32 %v2711_v23, %v3838_v28 }
0x176c   : > { %v2713_v61 = vmul.f32 0.33333334, %v2712_v60 }
0x176e   : > { %3255 = vmatmul.mubr.msk.f32.vlgmr.msra.gmra.mxu1 %vm437_vm2, %v2713_v61 }
0x182e   : > { %v2783_v62 = vpop.f32.mrf.mxu1 }
0x182f   : > { %v2784_v63 = vadd.f32 %v2783_v62, %v224_v48 }
0x1830   : > { %v3256_v44 = vpop.f32.mrf.mxu1 }
0x1831   : > { %2788 = vrot.lane.b32.xlu0 %v2784_v63, %s3449_s19 }
0x18a3   : > { %v2789_v3 = vpop.permute.xlu0 %2788 }
0x18a4   : > { %v2791_v7 = vsel %vm437_vm2, %v2713_v61, %v2789_v3 }
0x18a5   : > { %v2792_v5 = vsel %vm1575_vm13, %v2791_v7, 0.0 }
0x18a6   : > { %v2794_v9 = vrot.slane %v2792_v5, 7 }
0x18a8   : > { %v2797_v11 = vsel %vm2796_vm14, %v1576_v10, %v2794_v9 }
0x18a9   : > { %2798 = vst [vmem:[%s193_s26] sm:$0x3] %v2797_v11 }
0x18aa   : > { %3391 = shalt.err (!%p3388_p0)
}
0x18ab   : > { %s3392_s8 = scalar_lea.hbm %s3884_s30, 32  ;;  %s3396_s11 = scalar_lea.hbm %s3922_s3, 64 }
0x18ac   : > { %p3393_p1 = scmp.ne.s32.totalorder %s3884_s30, %s3392_s8  ;;  %p3397_p4 = scmp.lt.s32.totalorder %s3884_s30, %s3922_s3 }
0x18ad   : > { %p3398_p7 = scmp.lt.s32.totalorder %s3396_s11, %s3392_s8 }
0x18ae   : > { %p3394_p2 = pnand %p3393_p1, %p3509_p5 }
0x18af   : > { %p3399_p8 = por %p3398_p7, %p3397_p4 }
0x18b0   : > { %p3395_p3 = pneg %p3394_p2 }
0x18b2   : > { %p3400_p6 = pnand %p3399_p8, %p3395_p3 }
0x18b4   : > { %3403 = shalt.err (!%p3400_p6)
}
0x18b5   : > { %3261 = dma.vmem_to_hbm [thread:$0]  (%p3509_p5), %s2814_s27, 32, %s3884_s30, %s2800_s4  }
0x18b6 PF: > { %p3273_p9 = scmp.ge.s32.totalorder %s3442_s15, 2  ;;  %s2825_s20 = sand.u32 1, %s3430_s12  }
0x18b7   : > { %p3926_p10 = scmp.ne.s32.totalorder %s3924_s23, 0  ;;  %s2826_s24 = scalar_lea.sflag [#allocation4], %s2825_s20 }
0x18b9   : > { %p3268_p11 = pnand %p3273_p9, %p3926_p10 }
0x18bb   : > { %p3269_p12 = pneg %p3268_p11 }
0x18bd   : > { %3425 = dma.done.wait (%p3269_p12), %s2826_s24, 32  }
0x18be   : > { %3427 = vsyncadd (%p3269_p12), %s2826_s24, 4294967264  ;;  %p14_p13 = scmp.ge.s32.totalorder %s3496_s18, 4   ;;  %s3927_s12 = smov %s3434_s13 }
0x18bf   : > { %s3928_s13 = smov %s3438_s14  ;;  %s3929_s14 = smov %s3507_s21 }
0x18c0   : > { %s3930_s15 = smov %s3496_s18  ;;  %16 = sbr.rel (!%p14_p13) target bundleno = 4 (0x4), region = 76 }
0x18c5   :  { %2831 = vsyncpa [#allocation3], 1 }
0x18c6   :  { %2833 = vsyncpa [#allocation3 + $0x1], 1 }
0x18c7   :  { %2834 = vsyncpa [#allocation4], 1 }
0x18c8   :  { %2836 = vsyncpa [#allocation4 + $0x1], 1 }

</bundles_post_ra>
